<compile_context>
chip_gen: v6e
topology: v6e:2x2x1
jax: 0.10.0
libtpu: 0.0.40
codegen_flags: <defaults>
</compile_context>

<pallas_src>
import functools
import math

import jax
import jax.numpy as jnp
import numpy as np
from jax.experimental import pallas as pl
from jax.experimental.pallas import tpu as pltpu


_MASK_VALUE = -1e30  # finite "minus infinity" for masked (padded) key positions


# ---------------------------------------------------------------------------
# Kernel A: fused QKV projection + rotary embedding -> head-major outputs.
# ---------------------------------------------------------------------------
def _qkv_rope_kernel(x_ref, wqkv_ref, bqkv_ref, cos_ref, sin_ref,
                     q_ref, k_ref, v_ref, *, num_heads, head_dim):
  d_model = num_heads * head_dim
  half = head_dim // 2

  x2 = x_ref[0]                                           # (tp, D), MXU dtype
  tp = x2.shape[0]
  # One wide MXU matmul for Q, K and V (query scale folded into wqkv upstream).
  qkv = jnp.dot(x2, wqkv_ref[...],
                preferred_element_type=jnp.float32) + bqkv_ref[...]  # (tp, 3D) f32

  def heads(t2):                                          # (tp, D) -> (H, tp, hd)
    return jnp.transpose(t2.reshape(tp, num_heads, head_dim), (1, 0, 2))

  cos = cos_ref[...][None]                                # (1, tp, half) f32
  sin = sin_ref[...][None]

  def rope(t3):                                           # rotate-half RoPE, f32
    a1 = t3[..., :half]
    a2 = t3[..., half:]
    return jnp.concatenate([a1 * cos - a2 * sin, a2 * cos + a1 * sin], axis=-1)

  q_ref[0] = rope(heads(qkv[:, :d_model])).astype(q_ref.dtype)
  k_ref[0] = rope(heads(qkv[:, d_model:2 * d_model])).astype(k_ref.dtype)
  v_ref[0] = heads(qkv[:, 2 * d_model:]).astype(v_ref.dtype)


# ---------------------------------------------------------------------------
# Kernel B: flash attention (online softmax) + fused output projection.
# ---------------------------------------------------------------------------
def _flash_attn_kernel(q_ref, k_ref, v_ref, wo_ref, bo_ref, o_ref,
                       m_scr, l_scr, acc_scr, *,
                       mxu_dtype, approx_recip, seq_len, kv_tile, masked):
  ki = pl.program_id(2)

  @pl.when(ki == 0)
  def _init():
    m_scr[...] = jnp.full(m_scr.shape, -jnp.inf, m_scr.dtype)
    l_scr[...] = jnp.zeros(l_scr.shape, l_scr.dtype)
    acc_scr[...] = jnp.zeros(acc_scr.shape, acc_scr.dtype)

  q3 = q_ref[0]                                           # (H, tq, hd)
  k3 = k_ref[0]                                           # (H, tk, hd)
  v3 = v_ref[0]                                           # (H, tk, hd)

  # Scores; softmax_scale = 1.0 because the query scale is folded into wq.
  s = jnp.einsum("hld,hmd->hlm", q3, k3,
                 preferred_element_type=jnp.float32)      # (H, tq, tk) f32
  if masked:                                              # static: L was padded
    kpos = ki * kv_tile + jax.lax.broadcasted_iota(jnp.int32, s.shape, 2)
    s = jnp.where(kpos < seq_len, s, _MASK_VALUE)

  m_prev = m_scr[...]
  m_new = jnp.maximum(m_prev, s.max(axis=-1, keepdims=True))
  alpha = jnp.exp(m_prev - m_new)
  p = jnp.exp(s - m_new)                                  # f32 on the EUP
  # TODO(synk): fold the row-sum of p into the PV matmul (ones column on v) to
  # move this lane reduction from the XLU to the MXU; optionally compute the
  # exp in bf16 on v6e/v7x once numerics are validated.
  l_scr[...] = alpha * l_scr[...] + p.sum(axis=-1, keepdims=True)
  acc_scr[...] = alpha * acc_scr[...] + jnp.einsum(
      "hlm,hmd->hld", p.astype(mxu_dtype), v3,
      preferred_element_type=jnp.float32)
  m_scr[...] = m_new

  @pl.when(ki == pl.num_programs(2) - 1)
  def _finalize():
    num_heads, tq, head_dim = acc_scr.shape
    if approx_recip:
      o3 = acc_scr[...] * pl.reciprocal(l_scr[...], approx=True)
    else:
      o3 = acc_scr[...] / l_scr[...]
    attn = jnp.transpose(o3, (1, 0, 2)).reshape(tq, num_heads * head_dim)
    out = jnp.dot(attn.astype(mxu_dtype), wo_ref[...],
                  preferred_element_type=jnp.float32) + bo_ref[...]
    o_ref[0] = out.astype(o_ref.dtype)


# ---------------------------------------------------------------------------
# Wrapper
# ---------------------------------------------------------------------------
def _round_up(n, m):
  return ((n + m - 1) // m) * m


def _default_config():
  """Generation-aware defaults: (q_tile, kv_tile, vmem_limit_bytes)."""
  try:
    kind = jax.devices()[0].device_kind.lower()
  except Exception:
    kind = ""
  if "v5 lite" in kind or "v5e" in kind or "v5litepod" in kind:
    # 128x128 MXU, lowest HBM BW: tq=128 fills the MXU, big kv tiles, 128 MiB VMEM.
    return 128, 512, 96 * 1024 * 1024
  if "v6" in kind:
    # 256x256 MXU, 128 MiB VMEM: tq=256 fills the MXU M dim, allow big tiles.
    return 256, 512, 96 * 1024 * 1024
  # v7x (64 MiB physical VMEM) and unknown parts: conservative scratch budget.
  return 256, 256, 32 * 1024 * 1024


def _const_spec(shape, single_buffer):
  """BlockSpec for a grid-invariant block; single-buffered when supported."""
  index_map = lambda *_: (0,) * len(shape)
  if single_buffer and hasattr(pl, "Buffered"):
    try:
      return pl.BlockSpec(shape, index_map, pipeline_mode=pl.Buffered(1))
    except TypeError:  # pipeline_mode kwarg not available in this jax version
      pass
  return pl.BlockSpec(shape, index_map)


def _rope_flash_mha_impl(x, params, num_heads, *, mxu_dtype, q_tile, kv_tile,
                         vmem_limit_bytes, single_buffer_consts):
  B, L, D = x.shape
  head_dim = D // num_heads
  half = head_dim // 2
  scale = head_dim ** (-0.5)

  # ---- tiling: pad L up to a common multiple of the q / kv tiles instead of
  #      shrinking the tiles to a divisor of L (keeps lane-dense tiles).
  tq = min(q_tile, _round_up(L, 8))
  tk = min(kv_tile, _round_up(L, 8))
  lcm = (tq * tk) // math.gcd(tq, tk)
  L_pad = _round_up(L, lcm)
  masked = L_pad != L

  # ---- wrapper-side prep (fold into jit in production).
  x_p = x if not masked else jnp.pad(x, ((0, 0), (0, L_pad - L), (0, 0)))
  x_p = x_p.astype(mxu_dtype)       # cast to the MXU feed dtype ONCE, in HBM.

  # Rotary tables (FlashRotaryEmbedding: base=10000, non-interleaved,
  # pos_idx_in_fp32=True); half-width, f32.
  inv_freq = 1.0 / (10000.0 ** (jnp.arange(0, head_dim, 2, dtype=jnp.float32)
                                / head_dim))
  freqs = jnp.outer(jnp.arange(L_pad, dtype=jnp.float32), inv_freq)  # (L_pad, hd/2)
  cos_h = jnp.cos(freqs)
  sin_h = jnp.sin(freqs)

  # Fused QKV weight (in, 3*out) with the 1/sqrt(head_dim) query scale folded
  # into the q slice; pre-transposed so the kernels never transpose weights.
  wq, bq, wk, bk, wv, bv, wo, bo = params
  wqkv = jnp.concatenate(
      [wq.astype(jnp.float32) * scale, wk.astype(jnp.float32),
       wv.astype(jnp.float32)], axis=0).T.astype(mxu_dtype)           # (D, 3D)
  bqkv = jnp.concatenate(
      [bq.astype(jnp.float32) * scale, bk.astype(jnp.float32),
       bv.astype(jnp.float32)]).reshape(1, 3 * D)                     # f32
  wo_t = wo.astype(jnp.float32).T.astype(mxu_dtype)                   # (D, D)
  bo2 = bo.astype(jnp.float32).reshape(1, D)

  # -----------------------------------------------------------------
  # Kernel A: fused QKV projection + RoPE -> head-major (B, H, L, hd).
  # -----------------------------------------------------------------
  tp = tk                                    # projection row tile
  qkv_out_shape = tuple(
      jax.ShapeDtypeStruct((B, num_heads, L_pad, head_dim), mxu_dtype)
      for _ in range(3))
  qkv_out_specs = tuple(
      pl.BlockSpec((1, num_heads, tp, head_dim), lambda b, i: (b, 0, i, 0))
      for _ in range(3))
  proj_kernel = functools.partial(_qkv_rope_kernel, num_heads=num_heads,
                                  head_dim=head_dim)
  # TODO(synk): for very large D, also tile the 3*D output dim of the fused
  # projection weight (extra grid axis) instead of keeping it VMEM-resident.
  q_hm, k_hm, v_hm = pl.pallas_call(
      proj_kernel,
      out_shape=qkv_out_shape,
      grid=(B, L_pad // tp),
      in_specs=[
          pl.BlockSpec((1, tp, D), lambda b, i: (b, i, 0)),           # x rows
          _const_spec((D, 3 * D), single_buffer_consts),              # wqkv
          _const_spec((1, 3 * D), single_buffer_consts),              # bqkv
          pl.BlockSpec((tp, half), lambda b, i: (i, 0)),              # cos
          pl.BlockSpec((tp, half), lambda b, i: (i, 0)),              # sin
      ],
      out_specs=qkv_out_specs,
      compiler_params=pltpu.CompilerParams(
          dimension_semantics=("parallel", "parallel"),
          vmem_limit_bytes=vmem_limit_bytes),
  )(x_p, wqkv, bqkv, cos_h, sin_h)

  # -----------------------------------------------------------------
  # Kernel B: flash attention over kv tiles + fused output projection.
  # -----------------------------------------------------------------
  attn_kernel = functools.partial(
      _flash_attn_kernel, mxu_dtype=mxu_dtype,
      approx_recip=(mxu_dtype != jnp.float32),
      seq_len=L, kv_tile=tk, masked=masked)
  # TODO(synk): on v7x mark the batch axis pltpu.CORE_PARALLEL (or use
  # pl.core_map) to shard the grid across both TensorCores.
  out_p = pl.pallas_call(
      attn_kernel,
      out_shape=jax.ShapeDtypeStruct((B, L_pad, D), x.dtype),
      grid=(B, L_pad // tq, L_pad // tk),
      in_specs=[
          pl.BlockSpec((1, num_heads, tq, head_dim),
                       lambda b, qi, ki: (b, 0, qi, 0)),              # q
          pl.BlockSpec((1, num_heads, tk, head_dim),
                       lambda b, qi, ki: (b, 0, ki, 0)),              # k
          pl.BlockSpec((1, num_heads, tk, head_dim),
                       lambda b, qi, ki: (b, 0, ki, 0)),              # v
          _const_spec((D, D), single_buffer_consts),                  # wo
          _const_spec((1, D), single_buffer_consts),                  # bo
      ],
      out_specs=pl.BlockSpec((1, tq, D), lambda b, qi, ki: (b, qi, 0)),
      scratch_shapes=[
          pltpu.VMEM((num_heads, tq, 1), jnp.float32),        # running max m
          pltpu.VMEM((num_heads, tq, 1), jnp.float32),        # running denom l
          pltpu.VMEM((num_heads, tq, head_dim), jnp.float32), # unnormalized o
      ],
      compiler_params=pltpu.CompilerParams(
          dimension_semantics=("parallel", "parallel", "arbitrary"),
          vmem_limit_bytes=vmem_limit_bytes),
  )(q_hm, k_hm, v_hm, wo_t, bo2)

  return out_p[:, :L, :] if masked else out_p


def rope_flash_mha(x, params, num_heads, *, mxu_dtype=jnp.bfloat16,
                   q_tile=None, kv_tile=None, vmem_limit_bytes=None):
  """params = (wq, bq, wk, bk, wv, bv, wo, bo) with nn.Linear (out, in) shapes."""
  q_def, kv_def, vmem_def = _default_config()
  kwargs = dict(mxu_dtype=mxu_dtype,
                q_tile=q_tile or q_def,
                kv_tile=kv_tile or kv_def,
                vmem_limit_bytes=vmem_limit_bytes or vmem_def)
  try:
    return _rope_flash_mha_impl(x, params, num_heads,
                                single_buffer_consts=True, **kwargs)
  except Exception:
    # Fallback if pipeline_mode=pl.Buffered(1) is rejected by this jax/Mosaic
    # version; everything else about the kernels is identical.
    return _rope_flash_mha_impl(x, params, num_heads,
                                single_buffer_consts=False, **kwargs)


# ---------------------------------------------------------------------------
# Pure-JAX reference + self-test
# ---------------------------------------------------------------------------
def _reference(x, params, num_heads):
  """Pure-JAX f32 reference of the PyTorch forward (self-attn, no mask)."""
  B, L, D = x.shape
  hd = D // num_heads
  wq, bq, wk, bk, wv, bv, wo, bo = params
  q = (x @ wq.T + bq) * hd ** (-0.5)
  k = x @ wk.T + bk
  v = x @ wv.T + bv
  q = q.reshape(B, L, num_heads, hd)
  k = k.reshape(B, L, num_heads, hd)
  v = v.reshape(B, L, num_heads, hd)
  inv_freq = 1.0 / (10000.0 ** (jnp.arange(0, hd, 2, dtype=jnp.float32) / hd))
  freqs = jnp.outer(jnp.arange(L, dtype=jnp.float32), inv_freq)
  cos = jnp.cos(freqs)[None, :, None, :]
  sin = jnp.sin(freqs)[None, :, None, :]

  def rope(a):
    a1, a2 = a[..., :hd // 2], a[..., hd // 2:]
    return jnp.concatenate([a1 * cos - a2 * sin, a2 * cos + a1 * sin], axis=-1)

  q, k = rope(q), rope(k)
  s = jnp.einsum('blhd,bmhd->bhlm', q, k)
  p = jax.nn.softmax(s, axis=-1)
  o = jnp.einsum('bhlm,bmhd->blhd', p, v).reshape(B, L, D)
  return o @ wo.T + bo


def _init_linear(key, out_dim, in_dim):
  """Deterministic nn.Linear-style init (uniform +-1/sqrt(fan_in))."""
  kw, kb = jax.random.split(key)
  bound = 1.0 / np.sqrt(in_dim)
  w = jax.random.uniform(kw, (out_dim, in_dim), jnp.float32, -bound, bound)
  b = jax.random.uniform(kb, (out_dim,), jnp.float32, -bound, bound)
  return w, b


if __name__ == "__main__":
  B, L, D, H = 2, 8, 32, 4          # embed_dim=32, num_heads=4 -> head_dim=8

  root = jax.random.PRNGKey(0)
  kx, kq, kk, kv, ko = jax.random.split(root, 5)
  x = jax.random.normal(kx, (B, L, D), jnp.float32)

  wq, bq = _init_linear(kq, D, D)
  wk, bk = _init_linear(kk, D, D)
  wv, bv = _init_linear(kv, D, D)
  wo, bo = _init_linear(ko, D, D)
  params = (wq, bq, wk, bk, wv, bv, wo, bo)

  ref = jax.block_until_ready(_reference(x, params, H))

  # Full-precision MXU path: must closely match the f32 reference.
  out_f32 = jax.block_until_ready(
      rope_flash_mha(x, params, H, mxu_dtype=jnp.float32))
  np.testing.assert_allclose(np.asarray(out_f32), np.asarray(ref),
                             rtol=1e-4, atol=1e-4)

  # Default fast path: bf16 MXU feeds with f32 accumulation / softmax math.
  out_bf16 = jax.block_until_ready(rope_flash_mha(x, params, H))
  np.testing.assert_allclose(np.asarray(out_bf16), np.asarray(ref),
                             rtol=1e-1, atol=8e-2)

  print("KERNEL_OK")
</pallas_src>

<mosaic_0001>
module attributes {stable_mosaic.version = 11 : i64} {
  func.func @_qkv_rope_kernel(%arg0: i32, %arg1: i32, %arg2: memref<1x8x32xf32, #tpu.memory_space<vmem>>, %arg3: memref<32x96xf32, #tpu.memory_space<vmem>>, %arg4: memref<1x96xf32, #tpu.memory_space<vmem>>, %arg5: memref<8x4xf32, #tpu.memory_space<vmem>>, %arg6: memref<8x4xf32, #tpu.memory_space<vmem>>, %arg7: memref<1x4x8x8xf32, #tpu.memory_space<vmem>>, %arg8: memref<1x4x8x8xf32, #tpu.memory_space<vmem>>, %arg9: memref<1x4x8x8xf32, #tpu.memory_space<vmem>>) attributes {dimension_semantics = [#tpu.dimension_semantics<parallel>, #tpu.dimension_semantics<parallel>], iteration_bounds = array<i64: 2, 1>, scalar_prefetch = 0 : i64, scratch_operands = 0 : i64, tpu.core_type = #tpu.core_type<tc>, window_params = [{transform_indices = @transform_0, window_bounds = array<i64: 1, 8, 32>}, {pipeline_mode = #tpu.pipeline_mode<synchronous>, transform_indices = @transform_1, window_bounds = array<i64: 32, 96>}, {pipeline_mode = #tpu.pipeline_mode<synchronous>, transform_indices = @transform_2, window_bounds = array<i64: 1, 96>}, {transform_indices = @transform_3, window_bounds = array<i64: 8, 4>}, {transform_indices = @transform_4, window_bounds = array<i64: 8, 4>}, {transform_indices = @transform_5, window_bounds = array<i64: 1, 4, 8, 8>}, {transform_indices = @transform_6, window_bounds = array<i64: 1, 4, 8, 8>}, {transform_indices = @transform_7, window_bounds = array<i64: 1, 4, 8, 8>}]} {
    %c0 = arith.constant 0 : index
    %c0_0 = arith.constant 0 : index
    %c0_1 = arith.constant 0 : index
    %0 = vector.load %arg2[%c0, %c0_0, %c0_1] : memref<1x8x32xf32, #tpu.memory_space<vmem>>, vector<1x8x32xf32>
    %1 = vector.shape_cast %0 : vector<1x8x32xf32> to vector<8x32xf32>
    %c0_2 = arith.constant 0 : index
    %c0_3 = arith.constant 0 : index
    %2 = vector.load %arg3[%c0_2, %c0_3] : memref<32x96xf32, #tpu.memory_space<vmem>>, vector<32x96xf32>
    %cst = arith.constant dense<0.000000e+00> : vector<8x96xf32>
    %3 = tpu.matmul %1, %2, %cst {dimension_numbers = #tpu.dot_dimension_numbers<[1], [0], [0], [1], [0, 0, 1, 1], [], []>} : vector<8x32xf32>, vector<32x96xf32>, vector<8x96xf32> -> vector<8x96xf32>
    %c0_4 = arith.constant 0 : index
    %c0_5 = arith.constant 0 : index
    %4 = vector.load %arg4[%c0_4, %c0_5] : memref<1x96xf32, #tpu.memory_space<vmem>>, vector<1x96xf32>
    %5 = vector.broadcast %4 : vector<1x96xf32> to vector<8x96xf32>
    %6 = arith.addf %3, %5 : vector<8x96xf32>
    %c0_6 = arith.constant 0 : index
    %c0_7 = arith.constant 0 : index
    %7 = vector.load %arg5[%c0_6, %c0_7] : memref<8x4xf32, #tpu.memory_space<vmem>>, vector<8x4xf32>
    %8 = vector.shape_cast %7 : vector<8x4xf32> to vector<1x8x4xf32>
    %c0_8 = arith.constant 0 : index
    %c0_9 = arith.constant 0 : index
    %9 = vector.load %arg6[%c0_8, %c0_9] : memref<8x4xf32, #tpu.memory_space<vmem>>, vector<8x4xf32>
    %10 = vector.shape_cast %9 : vector<8x4xf32> to vector<1x8x4xf32>
    %11 = vector.extract_strided_slice %6 {offsets = [0, 0], sizes = [8, 32], strides = [1, 1]} : vector<8x96xf32> to vector<8x32xf32>
    %12 = vector.shape_cast %11 : vector<8x32xf32> to vector<8x4x8xf32>
    %13 = tpu.transpose %12, [1, 0, 2] : vector<8x4x8xf32> -> vector<4x8x8xf32>
    %14 = vector.extract_strided_slice %13 {offsets = [0, 0, 0], sizes = [4, 8, 4], strides = [1, 1, 1]} : vector<4x8x8xf32> to vector<4x8x4xf32>
    %15 = vector.extract_strided_slice %13 {offsets = [0, 0, 4], sizes = [4, 8, 4], strides = [1, 1, 1]} : vector<4x8x8xf32> to vector<4x8x4xf32>
    %16 = vector.broadcast %8 : vector<1x8x4xf32> to vector<4x8x4xf32>
    %17 = arith.mulf %14, %16 : vector<4x8x4xf32>
    %18 = vector.broadcast %10 : vector<1x8x4xf32> to vector<4x8x4xf32>
    %19 = arith.mulf %15, %18 : vector<4x8x4xf32>
    %20 = arith.subf %17, %19 : vector<4x8x4xf32>
    %21 = vector.broadcast %8 : vector<1x8x4xf32> to vector<4x8x4xf32>
    %22 = arith.mulf %15, %21 : vector<4x8x4xf32>
    %23 = vector.broadcast %10 : vector<1x8x4xf32> to vector<4x8x4xf32>
    %24 = arith.mulf %14, %23 : vector<4x8x4xf32>
    %25 = arith.addf %22, %24 : vector<4x8x4xf32>
    %26 = tpu.concatenate %20, %25 in 2 : vector<4x8x4xf32>, vector<4x8x4xf32> -> vector<4x8x8xf32>
    %c0_10 = arith.constant 0 : index
    %c0_11 = arith.constant 0 : index
    %c0_12 = arith.constant 0 : index
    %c0_13 = arith.constant 0 : index
    %27 = vector.load %arg7[%c0_10, %c0_11, %c0_12, %c0_13] : memref<1x4x8x8xf32, #tpu.memory_space<vmem>>, vector<1x4x8x8xf32>
    %28 = vector.shape_cast %27 : vector<1x4x8x8xf32> to vector<4x8x8xf32>
    %29 = vector.shape_cast %26 : vector<4x8x8xf32> to vector<1x4x8x8xf32>
    tpu.vector_store %arg7[%c0_10, %c0_11, %c0_12, %c0_13], %29 {strides = array<i32>} : memref<1x4x8x8xf32, #tpu.memory_space<vmem>>, vector<1x4x8x8xf32>,
    %30 = vector.extract_strided_slice %6 {offsets = [0, 32], sizes = [8, 32], strides = [1, 1]} : vector<8x96xf32> to vector<8x32xf32>
    %31 = vector.shape_cast %30 : vector<8x32xf32> to vector<8x4x8xf32>
    %32 = tpu.transpose %31, [1, 0, 2] : vector<8x4x8xf32> -> vector<4x8x8xf32>
    %33 = vector.extract_strided_slice %32 {offsets = [0, 0, 0], sizes = [4, 8, 4], strides = [1, 1, 1]} : vector<4x8x8xf32> to vector<4x8x4xf32>
    %34 = vector.extract_strided_slice %32 {offsets = [0, 0, 4], sizes = [4, 8, 4], strides = [1, 1, 1]} : vector<4x8x8xf32> to vector<4x8x4xf32>
    %35 = vector.broadcast %8 : vector<1x8x4xf32> to vector<4x8x4xf32>
    %36 = arith.mulf %33, %35 : vector<4x8x4xf32>
    %37 = vector.broadcast %10 : vector<1x8x4xf32> to vector<4x8x4xf32>
    %38 = arith.mulf %34, %37 : vector<4x8x4xf32>
    %39 = arith.subf %36, %38 : vector<4x8x4xf32>
    %40 = vector.broadcast %8 : vector<1x8x4xf32> to vector<4x8x4xf32>
    %41 = arith.mulf %34, %40 : vector<4x8x4xf32>
    %42 = vector.broadcast %10 : vector<1x8x4xf32> to vector<4x8x4xf32>
    %43 = arith.mulf %33, %42 : vector<4x8x4xf32>
    %44 = arith.addf %41, %43 : vector<4x8x4xf32>
    %45 = tpu.concatenate %39, %44 in 2 : vector<4x8x4xf32>, vector<4x8x4xf32> -> vector<4x8x8xf32>
    %c0_14 = arith.constant 0 : index
    %c0_15 = arith.constant 0 : index
    %c0_16 = arith.constant 0 : index
    %c0_17 = arith.constant 0 : index
    %46 = vector.load %arg8[%c0_14, %c0_15, %c0_16, %c0_17] : memref<1x4x8x8xf32, #tpu.memory_space<vmem>>, vector<1x4x8x8xf32>
    %47 = vector.shape_cast %46 : vector<1x4x8x8xf32> to vector<4x8x8xf32>
    %48 = vector.shape_cast %45 : vector<4x8x8xf32> to vector<1x4x8x8xf32>
    tpu.vector_store %arg8[%c0_14, %c0_15, %c0_16, %c0_17], %48 {strides = array<i32>} : memref<1x4x8x8xf32, #tpu.memory_space<vmem>>, vector<1x4x8x8xf32>,
    %49 = vector.extract_strided_slice %6 {offsets = [0, 64], sizes = [8, 32], strides = [1, 1]} : vector<8x96xf32> to vector<8x32xf32>
    %50 = vector.shape_cast %49 : vector<8x32xf32> to vector<8x4x8xf32>
    %51 = tpu.transpose %50, [1, 0, 2] : vector<8x4x8xf32> -> vector<4x8x8xf32>
    %c0_18 = arith.constant 0 : index
    %c0_19 = arith.constant 0 : index
    %c0_20 = arith.constant 0 : index
    %c0_21 = arith.constant 0 : index
    %52 = vector.load %arg9[%c0_18, %c0_19, %c0_20, %c0_21] : memref<1x4x8x8xf32, #tpu.memory_space<vmem>>, vector<1x4x8x8xf32>
    %53 = vector.shape_cast %52 : vector<1x4x8x8xf32> to vector<4x8x8xf32>
    %54 = vector.shape_cast %51 : vector<4x8x8xf32> to vector<1x4x8x8xf32>
    tpu.vector_store %arg9[%c0_18, %c0_19, %c0_20, %c0_21], %54 {strides = array<i32>} : memref<1x4x8x8xf32, #tpu.memory_space<vmem>>, vector<1x4x8x8xf32>,
    return
  }
  func.func @transform_0(%arg0: i32, %arg1: i32) -> (i32, i32, i32) {
    %c0_i32 = arith.constant 0 : i32
    %c0_i32_0 = arith.constant 0 : i32
    return %arg0, %arg1, %c0_i32 : i32, i32, i32
  }
  func.func @transform_1(%arg0: i32, %arg1: i32) -> (i32, i32) {
    %c0_i32 = arith.constant 0 : i32
    %c0_i32_0 = arith.constant 0 : i32
    %c0_i32_1 = arith.constant 0 : i32
    return %c0_i32, %c0_i32_0 : i32, i32
  }
  func.func @transform_2(%arg0: i32, %arg1: i32) -> (i32, i32) {
    %c0_i32 = arith.constant 0 : i32
    %c0_i32_0 = arith.constant 0 : i32
    %c0_i32_1 = arith.constant 0 : i32
    return %c0_i32, %c0_i32_0 : i32, i32
  }
  func.func @transform_3(%arg0: i32, %arg1: i32) -> (i32, i32) {
    %c0_i32 = arith.constant 0 : i32
    %c0_i32_0 = arith.constant 0 : i32
    return %arg1, %c0_i32 : i32, i32
  }
  func.func @transform_4(%arg0: i32, %arg1: i32) -> (i32, i32) {
    %c0_i32 = arith.constant 0 : i32
    %c0_i32_0 = arith.constant 0 : i32
    return %arg1, %c0_i32 : i32, i32
  }
  func.func @transform_5(%arg0: i32, %arg1: i32) -> (i32, i32, i32, i32) {
    %c0_i32 = arith.constant 0 : i32
    %c0_i32_0 = arith.constant 0 : i32
    %c0_i32_1 = arith.constant 0 : i32
    return %arg0, %c0_i32, %arg1, %c0_i32_0 : i32, i32, i32, i32
  }
  func.func @transform_6(%arg0: i32, %arg1: i32) -> (i32, i32, i32, i32) {
    %c0_i32 = arith.constant 0 : i32
    %c0_i32_0 = arith.constant 0 : i32
    %c0_i32_1 = arith.constant 0 : i32
    return %arg0, %c0_i32, %arg1, %c0_i32_0 : i32, i32, i32, i32
  }
  func.func @transform_7(%arg0: i32, %arg1: i32) -> (i32, i32, i32, i32) {
    %c0_i32 = arith.constant 0 : i32
    %c0_i32_0 = arith.constant 0 : i32
    %c0_i32_1 = arith.constant 0 : i32
    return %arg0, %c0_i32, %arg1, %c0_i32_0 : i32, i32, i32, i32
  }
}

module attributes {stable_mosaic.version = 11 : i64} {
  func.func @_qkv_rope_kernel(%arg0: i32, %arg1: i32, %arg2: memref<1x8x32xf32, #tpu.memory_space<vmem>>, %arg3: memref<32x96xf32, #tpu.memory_space<vmem>>, %arg4: memref<1x96xf32, #tpu.memory_space<vmem>>, %arg5: memref<8x4xf32, #tpu.memory_space<vmem>>, %arg6: memref<8x4xf32, #tpu.memory_space<vmem>>, %arg7: memref<1x4x8x8xf32, #tpu.memory_space<vmem>>, %arg8: memref<1x4x8x8xf32, #tpu.memory_space<vmem>>, %arg9: memref<1x4x8x8xf32, #tpu.memory_space<vmem>>) attributes {dimension_semantics = [#tpu.dimension_semantics<parallel>, #tpu.dimension_semantics<parallel>], iteration_bounds = array<i64: 2, 1>, scalar_prefetch = 0 : i64, scratch_operands = 0 : i64, tpu.core_type = #tpu.core_type<tc>, window_params = [{transform_indices = @transform_0, window_bounds = array<i64: 1, 8, 32>}, {pipeline_mode = #tpu.pipeline_mode<synchronous>, transform_indices = @transform_1, window_bounds = array<i64: 32, 96>}, {pipeline_mode = #tpu.pipeline_mode<synchronous>, transform_indices = @transform_2, window_bounds = array<i64: 1, 96>}, {transform_indices = @transform_3, window_bounds = array<i64: 8, 4>}, {transform_indices = @transform_4, window_bounds = array<i64: 8, 4>}, {transform_indices = @transform_5, window_bounds = array<i64: 1, 4, 8, 8>}, {transform_indices = @transform_6, window_bounds = array<i64: 1, 4, 8, 8>}, {transform_indices = @transform_7, window_bounds = array<i64: 1, 4, 8, 8>}]} {
    %c0 = arith.constant 0 : index
    %c0_0 = arith.constant 0 : index
    %c0_1 = arith.constant 0 : index
    %0 = vector.load %arg2[%c0, %c0_0, %c0_1] : memref<1x8x32xf32, #tpu.memory_space<vmem>>, vector<1x8x32xf32>
    %1 = vector.shape_cast %0 : vector<1x8x32xf32> to vector<8x32xf32>
    %c0_2 = arith.constant 0 : index
    %c0_3 = arith.constant 0 : index
    %2 = vector.load %arg3[%c0_2, %c0_3] : memref<32x96xf32, #tpu.memory_space<vmem>>, vector<32x96xf32>
    %cst = arith.constant dense<0.000000e+00> : vector<8x96xf32>
    %3 = tpu.matmul %1, %2, %cst {dimension_numbers = #tpu.dot_dimension_numbers<[1], [0], [0], [1], [0, 0, 1, 1], [], []>} : vector<8x32xf32>, vector<32x96xf32>, vector<8x96xf32> -> vector<8x96xf32>
    %c0_4 = arith.constant 0 : index
    %c0_5 = arith.constant 0 : index
    %4 = vector.load %arg4[%c0_4, %c0_5] : memref<1x96xf32, #tpu.memory_space<vmem>>, vector<1x96xf32>
    %5 = vector.broadcast %4 : vector<1x96xf32> to vector<8x96xf32>
    %6 = arith.addf %3, %5 : vector<8x96xf32>
    %c0_6 = arith.constant 0 : index
    %c0_7 = arith.constant 0 : index
    %7 = vector.load %arg5[%c0_6, %c0_7] : memref<8x4xf32, #tpu.memory_space<vmem>>, vector<8x4xf32>
    %8 = vector.shape_cast %7 : vector<8x4xf32> to vector<1x8x4xf32>
    %c0_8 = arith.constant 0 : index
    %c0_9 = arith.constant 0 : index
    %9 = vector.load %arg6[%c0_8, %c0_9] : memref<8x4xf32, #tpu.memory_space<vmem>>, vector<8x4xf32>
    %10 = vector.shape_cast %9 : vector<8x4xf32> to vector<1x8x4xf32>
    %11 = vector.extract_strided_slice %6 {offsets = [0, 0], sizes = [8, 32], strides = [1, 1]} : vector<8x96xf32> to vector<8x32xf32>
    %12 = vector.shape_cast %11 : vector<8x32xf32> to vector<8x4x8xf32>
    %13 = tpu.transpose %12, [1, 0, 2] : vector<8x4x8xf32> -> vector<4x8x8xf32>
    %14 = vector.extract_strided_slice %13 {offsets = [0, 0, 0], sizes = [4, 8, 4], strides = [1, 1, 1]} : vector<4x8x8xf32> to vector<4x8x4xf32>
    %15 = vector.extract_strided_slice %13 {offsets = [0, 0, 4], sizes = [4, 8, 4], strides = [1, 1, 1]} : vector<4x8x8xf32> to vector<4x8x4xf32>
    %16 = vector.broadcast %8 : vector<1x8x4xf32> to vector<4x8x4xf32>
    %17 = arith.mulf %14, %16 : vector<4x8x4xf32>
    %18 = vector.broadcast %10 : vector<1x8x4xf32> to vector<4x8x4xf32>
    %19 = arith.mulf %15, %18 : vector<4x8x4xf32>
    %20 = arith.subf %17, %19 : vector<4x8x4xf32>
    %21 = vector.broadcast %8 : vector<1x8x4xf32> to vector<4x8x4xf32>
    %22 = arith.mulf %15, %21 : vector<4x8x4xf32>
    %23 = vector.broadcast %10 : vector<1x8x4xf32> to vector<4x8x4xf32>
    %24 = arith.mulf %14, %23 : vector<4x8x4xf32>
    %25 = arith.addf %22, %24 : vector<4x8x4xf32>
    %26 = tpu.concatenate %20, %25 in 2 : vector<4x8x4xf32>, vector<4x8x4xf32> -> vector<4x8x8xf32>
    %c0_10 = arith.constant 0 : index
    %c0_11 = arith.constant 0 : index
    %c0_12 = arith.constant 0 : index
    %c0_13 = arith.constant 0 : index
    %27 = vector.load %arg7[%c0_10, %c0_11, %c0_12, %c0_13] : memref<1x4x8x8xf32, #tpu.memory_space<vmem>>, vector<1x4x8x8xf32>
    %28 = vector.shape_cast %27 : vector<1x4x8x8xf32> to vector<4x8x8xf32>
    %29 = vector.shape_cast %26 : vector<4x8x8xf32> to vector<1x4x8x8xf32>
    tpu.vector_store %arg7[%c0_10, %c0_11, %c0_12, %c0_13], %29 {strides = array<i32>} : memref<1x4x8x8xf32, #tpu.memory_space<vmem>>, vector<1x4x8x8xf32>,
    %30 = vector.extract_strided_slice %6 {offsets = [0, 32], sizes = [8, 32], strides = [1, 1]} : vector<8x96xf32> to vector<8x32xf32>
    %31 = vector.shape_cast %30 : vector<8x32xf32> to vector<8x4x8xf32>
    %32 = tpu.transpose %31, [1, 0, 2] : vector<8x4x8xf32> -> vector<4x8x8xf32>
    %33 = vector.extract_strided_slice %32 {offsets = [0, 0, 0], sizes = [4, 8, 4], strides = [1, 1, 1]} : vector<4x8x8xf32> to vector<4x8x4xf32>
    %34 = vector.extract_strided_slice %32 {offsets = [0, 0, 4], sizes = [4, 8, 4], strides = [1, 1, 1]} : vector<4x8x8xf32> to vector<4x8x4xf32>
    %35 = vector.broadcast %8 : vector<1x8x4xf32> to vector<4x8x4xf32>
    %36 = arith.mulf %33, %35 : vector<4x8x4xf32>
    %37 = vector.broadcast %10 : vector<1x8x4xf32> to vector<4x8x4xf32>
    %38 = arith.mulf %34, %37 : vector<4x8x4xf32>
    %39 = arith.subf %36, %38 : vector<4x8x4xf32>
    %40 = vector.broadcast %8 : vector<1x8x4xf32> to vector<4x8x4xf32>
    %41 = arith.mulf %34, %40 : vector<4x8x4xf32>
    %42 = vector.broadcast %10 : vector<1x8x4xf32> to vector<4x8x4xf32>
    %43 = arith.mulf %33, %42 : vector<4x8x4xf32>
    %44 = arith.addf %41, %43 : vector<4x8x4xf32>
    %45 = tpu.concatenate %39, %44 in 2 : vector<4x8x4xf32>, vector<4x8x4xf32> -> vector<4x8x8xf32>
    %c0_14 = arith.constant 0 : index
    %c0_15 = arith.constant 0 : index
    %c0_16 = arith.constant 0 : index
    %c0_17 = arith.constant 0 : index
    %46 = vector.load %arg8[%c0_14, %c0_15, %c0_16, %c0_17] : memref<1x4x8x8xf32, #tpu.memory_space<vmem>>, vector<1x4x8x8xf32>
    %47 = vector.shape_cast %46 : vector<1x4x8x8xf32> to vector<4x8x8xf32>
    %48 = vector.shape_cast %45 : vector<4x8x8xf32> to vector<1x4x8x8xf32>
    tpu.vector_store %arg8[%c0_14, %c0_15, %c0_16, %c0_17], %48 {strides = array<i32>} : memref<1x4x8x8xf32, #tpu.memory_space<vmem>>, vector<1x4x8x8xf32>,
    %49 = vector.extract_strided_slice %6 {offsets = [0, 64], sizes = [8, 32], strides = [1, 1]} : vector<8x96xf32> to vector<8x32xf32>
    %50 = vector.shape_cast %49 : vector<8x32xf32> to vector<8x4x8xf32>
    %51 = tpu.transpose %50, [1, 0, 2] : vector<8x4x8xf32> -> vector<4x8x8xf32>
    %c0_18 = arith.constant 0 : index
    %c0_19 = arith.constant 0 : index
    %c0_20 = arith.constant 0 : index
    %c0_21 = arith.constant 0 : index
    %52 = vector.load %arg9[%c0_18, %c0_19, %c0_20, %c0_21] : memref<1x4x8x8xf32, #tpu.memory_space<vmem>>, vector<1x4x8x8xf32>
    %53 = vector.shape_cast %52 : vector<1x4x8x8xf32> to vector<4x8x8xf32>
    %54 = vector.shape_cast %51 : vector<4x8x8xf32> to vector<1x4x8x8xf32>
    tpu.vector_store %arg9[%c0_18, %c0_19, %c0_20, %c0_21], %54 {strides = array<i32>} : memref<1x4x8x8xf32, #tpu.memory_space<vmem>>, vector<1x4x8x8xf32>,
    return
  }
  func.func @transform_0(%arg0: i32, %arg1: i32) -> (i32, i32, i32) {
    %c0_i32 = arith.constant 0 : i32
    %c0_i32_0 = arith.constant 0 : i32
    return %arg0, %arg1, %c0_i32 : i32, i32, i32
  }
  func.func @transform_1(%arg0: i32, %arg1: i32) -> (i32, i32) {
    %c0_i32 = arith.constant 0 : i32
    %c0_i32_0 = arith.constant 0 : i32
    %c0_i32_1 = arith.constant 0 : i32
    return %c0_i32, %c0_i32_0 : i32, i32
  }
  func.func @transform_2(%arg0: i32, %arg1: i32) -> (i32, i32) {
    %c0_i32 = arith.constant 0 : i32
    %c0_i32_0 = arith.constant 0 : i32
    %c0_i32_1 = arith.constant 0 : i32
    return %c0_i32, %c0_i32_0 : i32, i32
  }
  func.func @transform_3(%arg0: i32, %arg1: i32) -> (i32, i32) {
    %c0_i32 = arith.constant 0 : i32
    %c0_i32_0 = arith.constant 0 : i32
    return %arg1, %c0_i32 : i32, i32
  }
  func.func @transform_4(%arg0: i32, %arg1: i32) -> (i32, i32) {
    %c0_i32 = arith.constant 0 : i32
    %c0_i32_0 = arith.constant 0 : i32
    return %arg1, %c0_i32 : i32, i32
  }
  func.func @transform_5(%arg0: i32, %arg1: i32) -> (i32, i32, i32, i32) {
    %c0_i32 = arith.constant 0 : i32
    %c0_i32_0 = arith.constant 0 : i32
    %c0_i32_1 = arith.constant 0 : i32
    return %arg0, %c0_i32, %arg1, %c0_i32_0 : i32, i32, i32, i32
  }
  func.func @transform_6(%arg0: i32, %arg1: i32) -> (i32, i32, i32, i32) {
    %c0_i32 = arith.constant 0 : i32
    %c0_i32_0 = arith.constant 0 : i32
    %c0_i32_1 = arith.constant 0 : i32
    return %arg0, %c0_i32, %arg1, %c0_i32_0 : i32, i32, i32, i32
  }
  func.func @transform_7(%arg0: i32, %arg1: i32) -> (i32, i32, i32, i32) {
    %c0_i32 = arith.constant 0 : i32
    %c0_i32_0 = arith.constant 0 : i32
    %c0_i32_1 = arith.constant 0 : i32
    return %arg0, %c0_i32, %arg1, %c0_i32_0 : i32, i32, i32, i32
  }
}

</mosaic_0001>

<bundles_post_ra>
// kernel: tpu_custom_call.1
= control target key start
LH: loop header
LB: loop body
LE: loop exit
PB: predicated region body
PF: predicated region fallthrough
CT: control target
= control target key end

     0   :  { %s2097_s0 = inlined_call_operand.vmem [shape: f32[2,8,32], index: 0, kind: input, shape index: {}]   ;;  %s2098_s1 = inlined_call_operand.hbm [shape: f32[32,96], index: 1, kind: input, shape index: {}]   ;;  %s2099_s2 = inlined_call_operand.vmem [shape: f32[1,96], index: 2, kind: input, shape index: {}]   ;;  %s2100_s3 = inlined_call_operand.vmem [shape: f32[8,4], index: 3, kind: input, shape index: {}]   ;;  %s2101_s4 = inlined_call_operand.vmem [shape: f32[8,4], index: 4, kind: input, shape index: {}]   ;;  %s2102_s5 = inlined_call_operand.hbm [shape: f32[2,4,8,8], index: 5, kind: output, shape index: {0}]   ;;  %s2103_s6 = inlined_call_operand.hbm [shape: f32[2,4,8,8], index: 6, kind: output, shape index: {1}]   ;;  %s2104_s7 = inlined_call_operand.hbm [shape: f32[2,4,8,8], index: 7, kind: output, shape index: {2}]  }
   0x1   :  { %2107 = sst [smem:[#allocation12_spill]] %s2097_s0 }
   0x2   :  { %2108 = sst [smem:[#allocation13_spill]] %s2098_s1 }
   0x3   :  { %2109 = sst [smem:[#allocation14_spill]] %s2099_s2 }
   0x4   :  { %13 = vsyncpa [#allocation3], 0 }
   0x5   :  { %14 = vsyncpa [#allocation4], 0 }
   0x6   :  { %16 = vsyncpa [#allocation4 + $0x1], 0 }
   0x7   :  { %17 = vsyncpa [#allocation7], 0 }
   0x8   :  { %19 = vsyncpa [#allocation7 + $0x1], 0  ;;  %s1648_s24 = smov 0   ;;  %s1650_s25 = smov 0  }
   0x9   :  { %s1652_s26 = smov 0   ;;  %s1654_s27 = smov 0  }
   0xa   :  { %s1656_s28 = smov 0   ;;  %s1658_s29 = smov 0  }
   0xb LB: > { %s1679_s30 = sadd.s32 4294967295, %s1587_s29   ;;  %s2105_s8 = sadd.s32 4294967294, %s1587_s29   ;;  %s1587_s29 = sphi %s1658_s29, %s25_s29   ;;  %s1583_s28 = sphi %s1656_s28, %s2123_s28   ;;  %s1579_s27 = sphi %s1654_s27, %s2122_s27   ;;  %s1575_s26 = sphi %s1652_s26, %s2121_s26   ;;  %s1571_s25 = sphi %s1650_s25, %s2120_s25   ;;  %s1567_s24 = sphi %s1648_s24, %s2119_s24  }
   0xc   : > { %s37_s9 = sadd.s32 1, %s1583_s28  ;;  %s168_s10 = sadd.s32 1, %s1575_s26 }
   0xd   : > { %p39_p0 = scmp.ge.s32.totalorder %s37_s9, 2  ;;  %p178_p1 = scmp.ne.s32.totalorder %s1575_s26, %s1571_s25 }
   0xe   : > { %p179_p2 = scmp.eq.s32.totalorder %s1679_s30, 1  ;;  %p184_p3 = scmp.ne.s32.totalorder %s1571_s25, %s1567_s24 }
   0xf   : > { %s2125_s9 = smov (%p39_p0, %s37_s9), 0  ;;  %p185_p5 = scmp.eq.s32.totalorder %s2105_s8, 1 }
  0x10   : > { %p1691_p4 = por %p179_p2, %p178_p1  ;;  %s163_s12 = ssub.s32 %s1583_s28, %s2125_s9 }
  0x11   : > { %p1285_p6 = scmp.ge.s32.totalorder %s1587_s29, 1  ;;  %p166_p7 = scmp.eq.s32.totalorder %s163_s12, 0 }
  0x12   : > { %p1700_p8 = por %p185_p5, %p184_p3  ;;  %p248_p9 = scmp.lt.s32.totalorder %s1587_s29, 3 }
  0x13   : > { %s1706_s14 = scalar_select %p166_p7, %s1575_s26, %s168_s10  }
  0x14   : > { %p1708_p10 = pnand %p1285_p6, %p248_p9  ;;  %p1358_p11 = scmp.eq.s32.totalorder %s1679_s30, 0 }
  0x15   : > { %s1589_s16 = smov [#allocation2]  }
  0x16   : > { %p1344_p12 = pneg %p1708_p10  ;;  %s260_s17 = sshll.u32 %s1589_s16, 4  ;;  %s261_s17 = int_to_ptr.vmem [resolvable:$true] %s260_s17 }
  0x17   : > { %s1436_s18 = scalar_lea.vmem %s261_s17, 512  ;;  %p1444_p5 = scmp.lt.s32.totalorder %s261_s17, %s261_s17 }
  0x18   : > { %p1345_p13 = pnand %p1358_p11, %p1344_p12  ;;  %p1437_p1 = scmp.ne.s32.totalorder %s261_s17, %s1436_s18 }
  0x19   : > { %p1445_p7 = scmp.lt.s32.totalorder %s1436_s18, %s1436_s18 }
  0x1a   : > { %p1427_p0 = pneg %p1345_p13 }
  0x1b   : > { %p1446_p6 = por %p1445_p7, %p1444_p5 }
  0x1c   : > { %p1439_p2 = pnand %p1437_p1, %p1427_p0 }
  0x1e   : > { %p1440_p3 = pneg %p1439_p2 }
  0x20   : > { %p1447_p9 = pnand %p1446_p6, %p1440_p3 }
  0x22   : > { %1450 = shalt.err (!%p1447_p9)
}
  0x23   : > { %s1590_s19 = smov 128   ;;  %s1591_s20 = smov 8  }
  0x24   : > { %s2113_s1 = sld [smem:[#allocation13_spill]] }
  0x26   : > { %303 = sbr.rel (%p1708_p10) target bundleno = 698 (0x2ba), region = 40 }
  0x2a   : > { %1347 = dma.hbm_to_vmem [thread:$0]  (!%p1345_p13), %s2113_s1, 512, %s261_s17, [#allocation3], %s1590_s19, %s1590_s19, %s1591_s20  }
  0x2b   : > { %1554 = dma.done.wait (%p1358_p11), [#allocation3], 512  }
  0x2c   : > { %1556 = vsyncadd (%p1358_p11), [#allocation3], 4294966784  ;;  %p355_p12 = scmp.lt.s32.totalorder %s1579_s27, 1  ;;  %v1592_v0 = vmov 0.0   ;;  %vm1593_vm0 = vmmov 0   ;;  %v374_v1 = vld [vmem:[#allocation2 + $0x18] sm:$0xff]  ;;  %v473_v12 = vlaneseq }
  0x2d   : > { %1323 = vmatprep.subr.mxu0 %v1592_v0  ;;  %1331 = vmatprep.mubr.msk.f32.mxu0 %vm1593_vm0, %v1592_v0  ;;  %v373_v2 = vld [vmem:[#allocation2 + $0x10] sm:$0xff]  ;;  %v372_v3 = vld [vmem:[#allocation2 + $0x8] sm:$0xff]  ;;  %s2114_s0 = sld [smem:[#allocation12_spill]]  ;;  %v371_v4 = vld [vmem:[#allocation2] sm:$0xff]  ;;  %vm382_vm1 = vcmask 261120   ;;  %s1594_s19 = smov 104  }
  0x2e   : > { %s356_s23 = scalar_select %p355_p12, %s1579_s27, 1  ;;  %1324 = vmatpush3.msra.mxu0 %v374_v1  ;;  %v1598_v10 = vmov 1983009808   ;;  %v1599_v13 = vmov 1934713408   ;;  %v474_v16 = vshrl.u32 %v473_v12, 7 }
  0x2f   : > { %1325 = vmatprep.subr.mxu0 %v1592_v0  ;;  %s2115_s2 = sld [smem:[#allocation14_spill]]  ;;  %s1595_s20 = smov 120   ;;  %v471_v11 = vunpack.c.l.s4 %v1598_v10  ;;  %v503_v14 = vunpack.c.l.s4 %v1599_v13  ;;  %v1745_v31 = vld [vmem:[%s2101_s4] sm:$0xff]  ;;  %vm673_vm2 = vcmask 64512   ;;  %vm668_vm3 = vcmask 31744  }
  0x30   : > { %s1295_s10 = sshll.u32 %s356_s23, 3  ;;  %1326 = vmatpush3.msra.mxu0 %v373_v2  ;;  %s1596_s21 = smov 96   ;;  %v1752_v36 = vld [vmem:[%s2100_s3] sm:$0xff] }
  0x31   : > { %1327 = vmatprep.subr.mxu0 %v1592_v0  ;;  %s1597_s22 = smov 112   ;;  %v472_v15 = vunpack.c.0.s8 %v471_v11  ;;  %v504_v21 = vunpack.c.0.s8 %v503_v14  ;;  %s1600_s12 = smov 64  }
  0x32   : > { %1328 = vmatpush3.msra.mxu0 %v372_v3  ;;  %s1601_s15 = smov 4   ;;  %s1602_s18 = smov 124  }
  0x33   : > { %s361_s16 = scalar_lea.vmem %s2114_s0, %s1295_s10  ;;  %1329 = vmatprep.subr.mxu0 %v1592_v0  ;;  %v1734_v22 = vsub.s32 %v472_v15, %v474_v16  ;;  %v1736_v26 = vsub.s32 %v504_v21, %v474_v16  ;;  %s1603_s0 = smov [#allocation6]  }
  0x34   : > { %v370_v5 = vld [vmem:[%s361_s16] sm:$0xff]  ;;  %1330 = vmatpush3.msra.mxu0 %v371_v4  ;;  %s1315_s16 = sshll.u32 %s1579_s27, 9  ;;  %s1455_s8 = sshll.u32 %s1603_s0, 4  ;;  %s1456_s8 = int_to_ptr.vmem [resolvable:$false] %s1455_s8 }
  0x35   : > { %1332 = vmatmul.mubr.msk.f32.vlgmr.msra.gmra.mxu0 %vm382_vm1, %v370_v5  ;;  %v1296_v6 = vld [vmem:[%s2115_s2] ss:$0 sm:$0xff] }
  0xf5   : > { %v452_v7 = vpop.f32.mrf.mxu0 }
  0xf6   : > { %v453_v8 = vadd.f32 %v1296_v6, %v452_v7 }
  0xf7   : > { %v1333_v9 = vpop.f32.mrf.mxu0 }
  0xf8   : > { %465 = vrot.lane.b32.xlu1 %v453_v8, %s1594_s19  ;;  %459 = vrot.lane.b32.xlu0 %v453_v8, %s1595_s20  ;;  %s2106_s19 = sand.u32 1, %s1571_s25  }
  0xf9   : > { %s1857_s20 = sshll.u32 %s2106_s19, 5  ;;  %s1457_s19 = scalar_lea.vmem %s1456_s8, 1024 }
  0xfa   : > { %s1926_s23 = scalar_lea.vmem [#allocation6], %s1857_s20 }
  0xfb   : > { %s1084_s10 = sshll.u32 %s1926_s23, 4  ;;  %s1941_s10 = int_to_ptr.vmem [resolvable:$true] %s1084_s10 }
  0xfc   : > { %678 = vrot.lane.b32.xlu1 %v453_v8, %s1596_s21  ;;  %462 = vrot.lane.b32.xlu0 %v453_v8, %s1597_s22  ;;  %s1915_s22 = scalar_lea.vmem [#allocation5], %s1857_s20  ;;  %p1458_p0 = scmp.lt.s32.totalorder %s1941_s10, %s1456_s8 }
 0x16a   : > { %v466_v17 = vpop.permute.xlu1 %465  ;;  %v460_v18 = vpop.permute.xlu0 %459 }
 0x16b   : > { %v484_v19 = vcombine.low %v460_v18, %v466_v17  ;;  %v485_v20 = vcombine.high %v460_v18, %v466_v17  ;;  %680 = vrot.lane.b32.xlu0 %v460_v18, %s1596_s21 }
 0x16d   : > { %v492_v27 = vrot.slane %v484_v19, %v1734_v22  ;;  %v499_v28 = vrot.slane %v485_v20, %v1734_v22 }
 0x16e   : > { %v463_v23 = vpop.permute.xlu0 %462  ;;  %v679_v61 = vpop.permute.xlu1 %678 }
 0x16f   : > { %v468_v24 = vcombine.low %v453_v8, %v463_v23  ;;  %v469_v25 = vcombine.high %v453_v8, %v463_v23  ;;  %684 = vrot.lane.b32.xlu0 %v466_v17, %s1596_s21  ;;  %682 = vrot.lane.b32.xlu1 %v463_v23, %s1596_s21  ;;  %s1882_s21 = scalar_lea.vmem [#allocation8], %s1857_s20  ;;  %s1960_s20 = scalar_lea.hbm %s2103_s6, %s1315_s16 }
 0x170   : > { %s1101_s17 = sshll.u32 %s1882_s21, 4  ;;  %s1962_s17 = int_to_ptr.vmem [resolvable:$true] %s1101_s17 }
 0x171   : > { %v476_v29 = vrot.slane %v468_v24, %v1734_v22  ;;  %v483_v30 = vrot.slane %v469_v25, %v1734_v22 }
 0x173   : > { %v500_v32 = vcombine.low %v476_v29, %v492_v27  ;;  %v501_v33 = vcombine.high %v476_v29, %v492_v27  ;;  %v516_v34 = vcombine.low %v483_v30, %v499_v28  ;;  %v517_v35 = vcombine.high %v483_v30, %v499_v28  ;;  %890 = vrot.lane.b32.xlu0 %v453_v8, %s1600_s12 }
 0x174   : > { %609 = vrot.lane.b32.xlu1 %v1745_v31, %s1601_s15 }
 0x175   : > { %v508_v37 = vrot.slane %v500_v32, %v1736_v26  ;;  %v515_v38 = vrot.slane %v501_v33, %v1736_v26  ;;  %v524_v39 = vrot.slane %v516_v34, %v1736_v26  ;;  %v531_v40 = vrot.slane %v517_v35, %v1736_v26 }
 0x177   : > { %v536_v41 = vcombine.low %v508_v37, %v515_v38  ;;  %v1298_v42 = vcombine.high %v508_v37, %v515_v38  ;;  %v552_v43 = vcombine.low %v524_v39, %v531_v40  ;;  %v1299_v44 = vcombine.high %v524_v39, %v531_v40  ;;  %637 = vrot.lane.b32.xlu0 %v1752_v36, %s1601_s15 }
 0x178   : > { %892 = vrot.lane.b32.xlu1 %v460_v18, %s1600_s12 }
 0x179   : > { %v543_v45 = vrot.slane %v536_v41, %v1734_v22  ;;  %v551_v46 = vrot.slane %v1298_v42, %v1734_v22  ;;  %v559_v47 = vrot.slane %v552_v43, %v1734_v22  ;;  %v567_v48 = vrot.slane %v1299_v44, %v1734_v22 }
 0x17b   : > { %894 = vrot.lane.b32.xlu0 %v463_v23, %s1600_s12  ;;  %v568_v49 = vcombine.low %v543_v45, %v551_v46  ;;  %v584_v50 = vcombine.low %v559_v47, %v567_v48  ;;  %v569_v51 = vcombine.high %v543_v45, %v551_v46  ;;  %v585_v52 = vcombine.high %v559_v47, %v567_v48 }
 0x17c   : > { %896 = vrot.lane.b32.xlu1 %v466_v17, %s1600_s12  ;;  %s1984_s12 = scalar_lea.hbm %s2102_s5, %s1315_s16 }
 0x17d   : > { %v576_v53 = vrot.slane %v568_v49, %v1736_v26  ;;  %v592_v54 = vrot.slane %v584_v50, %v1736_v26  ;;  %v583_v55 = vrot.slane %v569_v51, %v1736_v26  ;;  %v599_v56 = vrot.slane %v585_v52, %v1736_v26 }
 0x17f   : > { %v1768_v57 = vcombine.high %v576_v53, %v592_v54  ;;  %v1770_v58 = vcombine.low %v576_v53, %v592_v54  ;;  %v1772_v59 = vcombine.high %v583_v55, %v599_v56  ;;  %v1774_v60 = vcombine.low %v583_v55, %v599_v56 }
 0x181   : > { %v645_v38 = vmul.f32 %v1768_v57, %v1745_v31  ;;  %v644_v39 = vmul.f32 %v1770_v58, %v1745_v31 }
 0x1dd   : > { %v681_v62 = vpop.permute.xlu0 %680 }
 0x1e1   : > { %v683_v63 = vpop.permute.xlu1 %682  ;;  %v685_v0 = vpop.permute.xlu0 %684 }
 0x1e2   : > { %v690_v1 = vcombine.low %v679_v61, %v683_v63  ;;  %v691_v2 = vcombine.high %v679_v61, %v683_v63  ;;  %v706_v3 = vcombine.low %v681_v62, %v685_v0  ;;  %v707_v4 = vcombine.high %v681_v62, %v685_v0 }
 0x1e4   : > { %v698_v5 = vrot.slane %v690_v1, %v1734_v22  ;;  %v705_v6 = vrot.slane %v691_v2, %v1734_v22  ;;  %v714_v7 = vrot.slane %v706_v3, %v1734_v22  ;;  %v721_v8 = vrot.slane %v707_v4, %v1734_v22 }
 0x1e5   : > { %v891_v9 = vpop.permute.xlu0 %890 }
 0x1e6   : > { %v722_v10 = vcombine.low %v698_v5, %v714_v7  ;;  %v723_v11 = vcombine.high %v698_v5, %v714_v7  ;;  %v738_v12 = vcombine.low %v705_v6, %v721_v8  ;;  %v739_v13 = vcombine.high %v705_v6, %v721_v8  ;;  %v1780_v14 = vpop.permute.xlu1 %609 }
 0x1e7   : > { %v613_v15 = vmul.f32 %v1780_v14, %v1768_v57  ;;  %v612_v16 = vmul.f32 %v1780_v14, %v1770_v58  ;;  %v615_v29 = vmul.f32 %v1780_v14, %v1772_v59  ;;  %v614_v30 = vmul.f32 %v1780_v14, %v1774_v60 }
 0x1e8   : > { %v730_v17 = vrot.slane %v722_v10, %v1736_v26  ;;  %v737_v18 = vrot.slane %v723_v11, %v1736_v26  ;;  %v746_v19 = vrot.slane %v738_v12, %v1736_v26  ;;  %v753_v20 = vrot.slane %v739_v13, %v1736_v26 }
 0x1e9   : > { %622 = vrot.lane.b32.xlu0 %v613_v15, %s1602_s18  ;;  %620 = vrot.lane.b32.xlu1 %v612_v16, %s1602_s18  ;;  %v1792_v21 = vpop.permute.xlu0 %637 }
 0x1ea   : > { %v758_v23 = vcombine.low %v730_v17, %v737_v18  ;;  %v1300_v24 = vcombine.high %v730_v17, %v737_v18  ;;  %v774_v25 = vcombine.low %v746_v19, %v753_v20  ;;  %v1301_v27 = vcombine.high %v746_v19, %v753_v20  ;;  %v893_v28 = vpop.permute.xlu1 %892 }
 0x1ec   : > { %v765_v32 = vrot.slane %v758_v23, %v1734_v22  ;;  %v773_v33 = vrot.slane %v1300_v24, %v1734_v22  ;;  %v781_v34 = vrot.slane %v774_v25, %v1734_v22  ;;  %v789_v35 = vrot.slane %v1301_v27, %v1734_v22 }
 0x1ed   : > { %626 = vrot.lane.b32.xlu0 %v615_v29, %s1602_s18  ;;  %624 = vrot.lane.b32.xlu1 %v614_v30, %s1602_s18  ;;  %v895_v37 = vpop.permute.xlu0 %894 }
 0x1ee   : > { %v790_v40 = vcombine.low %v765_v32, %v773_v33  ;;  %v791_v41 = vcombine.high %v765_v32, %v773_v33  ;;  %v806_v42 = vcombine.low %v781_v34, %v789_v35  ;;  %v807_v43 = vcombine.high %v781_v34, %v789_v35  ;;  %v897_v44 = vpop.permute.xlu1 %896 }
 0x1ef   : > { %v918_v45 = vcombine.low %v893_v28, %v897_v44  ;;  %v919_v46 = vcombine.high %v893_v28, %v897_v44  ;;  %v902_v47 = vcombine.low %v891_v9, %v895_v37  ;;  %v903_v48 = vcombine.high %v891_v9, %v895_v37 }
 0x1f0   : > { %v798_v49 = vrot.slane %v790_v40, %v1736_v26  ;;  %v814_v50 = vrot.slane %v806_v42, %v1736_v26  ;;  %v805_v51 = vrot.slane %v791_v41, %v1736_v26  ;;  %v821_v52 = vrot.slane %v807_v43, %v1736_v26 }
 0x1f1   : > { %v926_v53 = vrot.slane %v918_v45, %v1734_v22  ;;  %v933_v54 = vrot.slane %v919_v46, %v1734_v22  ;;  %v910_v55 = vrot.slane %v902_v47, %v1734_v22  ;;  %v917_v56 = vrot.slane %v903_v48, %v1734_v22  ;;  %654 = vrot.lane.b32.xlu0 %v645_v38, %s1601_s15 }
 0x1f2   : > { %652 = vrot.lane.b32.xlu1 %v644_v39, %s1601_s15  ;;  %v1818_v61 = vcombine.high %v798_v49, %v814_v50  ;;  %v1820_v62 = vcombine.low %v798_v49, %v814_v50  ;;  %v1826_v5 = vcombine.high %v805_v51, %v821_v52  ;;  %v1828_v6 = vcombine.low %v805_v51, %v821_v52 }
 0x1f3   : > { %v934_v63 = vcombine.low %v910_v55, %v926_v53  ;;  %v935_v0 = vcombine.high %v910_v55, %v926_v53  ;;  %v950_v1 = vcombine.low %v917_v56, %v933_v54  ;;  %v951_v2 = vcombine.high %v917_v56, %v933_v54 }
 0x1f4   : > { %v831_v3 = vmul.f32 %v1818_v61, %v1780_v14  ;;  %v830_v4 = vmul.f32 %v1820_v62, %v1780_v14  ;;  %v833_v16 = vmul.f32 %v1826_v5, %v1780_v14  ;;  %v832_v17 = vmul.f32 %v1828_v6, %v1780_v14 }
 0x1f5   : > { %v942_v7 = vrot.slane %v934_v63, %v1736_v26  ;;  %v949_v8 = vrot.slane %v935_v0, %v1736_v26  ;;  %v958_v9 = vrot.slane %v950_v1, %v1736_v26  ;;  %v965_v10 = vrot.slane %v951_v2, %v1736_v26 }
 0x1f6   : > { %840 = vrot.lane.b32.xlu0 %v831_v3, %s1602_s18  ;;  %838 = vrot.lane.b32.xlu1 %v830_v4, %s1602_s18  ;;  %v1849_v24 = vmul.f32 %v1820_v62, %v1792_v21  ;;  %v1853_v14 = vmul.f32 %v1818_v61, %v1792_v21  ;;  %v858_v30 = vmul.f32 %v1820_v62, %v1745_v31 }
 0x1f7   : > { %v970_v11 = vcombine.low %v942_v7, %v949_v8  ;;  %v1302_v12 = vcombine.high %v942_v7, %v949_v8  ;;  %v986_v13 = vcombine.low %v958_v9, %v965_v10  ;;  %v1303_v15 = vcombine.high %v958_v9, %v965_v10 }
 0x1f8   : > { %v1865_v32 = vmul.f32 %v1828_v6, %v1792_v21  ;;  %v1869_v33 = vmul.f32 %v1826_v5, %v1792_v21  ;;  %v861_v43 = vmul.f32 %v1826_v5, %v1745_v31  ;;  %v860_v44 = vmul.f32 %v1828_v6, %v1745_v31 }
 0x1f9   : > { %v977_v18 = vrot.slane %v970_v11, %v1734_v22  ;;  %v985_v19 = vrot.slane %v1302_v12, %v1734_v22  ;;  %v993_v20 = vrot.slane %v986_v13, %v1734_v22  ;;  %v1001_v23 = vrot.slane %v1303_v15, %v1734_v22 }
 0x1fa   : > { %844 = vrot.lane.b32.xlu0 %v833_v16, %s1602_s18  ;;  %842 = vrot.lane.b32.xlu1 %v832_v17, %s1602_s18  ;;  %v859_v22 = vmul.f32 %v1818_v61, %v1745_v31  ;;  %v646_v45 = vmul.f32 %v1774_v60, %v1745_v31  ;;  %v605_v50 = vmul.f32 %v1768_v57, %v1752_v36  ;;  %s1973_s18 = scalar_lea.hbm %s2104_s7, %s1315_s16 }
 0x1fb   : > { %v1002_v25 = vcombine.low %v977_v18, %v985_v19  ;;  %v1003_v27 = vcombine.high %v977_v18, %v985_v19  ;;  %v1018_v28 = vcombine.low %v993_v20, %v1001_v23  ;;  %v1019_v29 = vcombine.high %v993_v20, %v1001_v23 }
 0x1fc   : > { %v641_v51 = vmul.f32 %v1792_v21, %v1768_v57  ;;  %v640_v52 = vmul.f32 %v1792_v21, %v1770_v58  ;;  %v826_v7 = vmul.f32 %v1820_v62, %v1752_v36  ;;  %v827_v8 = vmul.f32 %v1818_v61, %v1752_v36 }
 0x1fd   : > { %v1010_v34 = vrot.slane %v1002_v25, %v1736_v26  ;;  %v1017_v35 = vrot.slane %v1003_v27, %v1736_v26  ;;  %v1026_v37 = vrot.slane %v1018_v28, %v1736_v26  ;;  %v1033_v38 = vrot.slane %v1019_v29, %v1736_v26 }
 0x1fe   : > { %868 = vrot.lane.b32.xlu0 %v859_v22, %s1601_s15  ;;  %866 = vrot.lane.b32.xlu1 %v858_v30, %s1601_s15  ;;  %v647_v26 = vmul.f32 %v1772_v59, %v1745_v31  ;;  %v604_v31 = vmul.f32 %v1770_v58, %v1752_v36  ;;  %v828_v61 = vmul.f32 %v1828_v6, %v1752_v36 }
 0x1ff   : > { %v1034_v39 = vcombine.low %v1010_v34, %v1026_v37  ;;  %v1035_v40 = vcombine.high %v1010_v34, %v1026_v37  ;;  %v1036_v41 = vcombine.low %v1017_v35, %v1033_v38  ;;  %v1037_v42 = vcombine.high %v1017_v35, %v1033_v38 }
 0x200   : > { %v829_v62 = vmul.f32 %v1826_v5, %v1752_v36  ;;  %v642_v28 = vmul.f32 %v1792_v21, %v1774_v60 }
 0x201   : > { %1038 = vst.msk [vmem:[%s1882_s21] sm:$0xff] %vm673_vm2, %v1034_v39  ;;  %1039 = vst.msk [vmem:[%s1882_s21 + $0x8] sm:$0xff] %vm673_vm2, %v1035_v40 }
 0x202   : > { %1040 = vst.msk [vmem:[%s1882_s21 + $0x10] sm:$0xff] %vm673_vm2, %v1036_v41  ;;  %1041 = vst.msk [vmem:[%s1882_s21 + $0x18] sm:$0xff] %vm673_vm2, %v1037_v42  ;;  %872 = vrot.lane.b32.xlu0 %v861_v43, %s1601_s15  ;;  %870 = vrot.lane.b32.xlu1 %v860_v44, %s1601_s15  ;;  %s2116_s21 = sand.u32 1, %s1679_s30  }
 0x203   : > { %s1992_s27 = scalar_lea.sflag [#allocation7], %s2116_s21 }
 0x206   : > { %658 = vrot.lane.b32.xlu0 %v647_v26, %s1601_s15  ;;  %656 = vrot.lane.b32.xlu1 %v646_v45, %s1601_s15  ;;  %s1067_s15 = sshll.u32 %s1915_s22, 4  ;;  %s1975_s15 = int_to_ptr.vmem [resolvable:$true] %s1067_s15 }
 0x25b   : > { %v621_v46 = vpop.permute.xlu1 %620  ;;  %v623_v47 = vpop.permute.xlu0 %622 }
 0x25c   : > { %v633_v54 = vsub.f32 %v605_v50, %v623_v47  ;;  %v632_v63 = vsub.f32 %v604_v31, %v621_v46 }
 0x25f   : > { %v1900_v48 = vpop.permute.xlu1 %624  ;;  %v1902_v49 = vpop.permute.xlu0 %626 }
 0x263   : > { %v655_v53 = vpop.permute.xlu0 %654 }
 0x264   : > { %v653_v55 = vpop.permute.xlu1 %652  ;;  %v665_v56 = vadd.f32 %v655_v53, %v641_v51 }
 0x265   : > { %v664_v0 = vadd.f32 %v653_v55, %v640_v52 }
 0x266   : > { %v670_v1 = vsel %vm668_vm3, %v633_v54, %v665_v56 }
 0x267   : > { %v669_v2 = vsel %vm668_vm3, %v632_v63, %v664_v0  ;;  %675 = vst.msk [vmem:[%s1915_s22 + $0x8] sm:$0xff] %vm673_vm2, %v670_v1 }
 0x268   : > { %674 = vst.msk [vmem:[%s1915_s22] sm:$0xff] %vm673_vm2, %v669_v2  ;;  %v839_v57 = vpop.permute.xlu1 %838  ;;  %v841_v58 = vpop.permute.xlu0 %840 }
 0x269   : > { %v850_v11 = vsub.f32 %v826_v7, %v839_v57  ;;  %v851_v12 = vsub.f32 %v827_v8, %v841_v58 }
 0x26c   : > { %v843_v3 = vpop.permute.xlu1 %842  ;;  %v845_v4 = vpop.permute.xlu0 %844 }
 0x26d   : > { %v852_v6 = vsub.f32 %v828_v61, %v843_v3  ;;  %v853_v20 = vsub.f32 %v829_v62, %v845_v4 }
 0x270   : > { %v867_v9 = vpop.permute.xlu1 %866  ;;  %v869_v10 = vpop.permute.xlu0 %868 }
 0x271   : > { %v878_v13 = vadd.f32 %v867_v9, %v1849_v24  ;;  %v879_v15 = vadd.f32 %v869_v10, %v1853_v14  ;;  %v1951_v24 = vmul.f32 %v1774_v60, %v1752_v36  ;;  %v1955_v14 = vmul.f32 %v1772_v59, %v1752_v36 }
 0x272   : > { %v643_v36 = vmul.f32 %v1792_v21, %v1772_v59 }
 0x273   : > { %v882_v16 = vsel %vm668_vm3, %v850_v11, %v878_v13  ;;  %v883_v17 = vsel %vm668_vm3, %v851_v12, %v879_v15  ;;  %v634_v59 = vsub.f32 %v1951_v24, %v1900_v48  ;;  %v635_v60 = vsub.f32 %v1955_v14, %v1902_v49 }
 0x274   : > { %886 = vst.msk [vmem:[%s1926_s23] sm:$0xff] %vm673_vm2, %v882_v16  ;;  %887 = vst.msk [vmem:[%s1926_s23 + $0x8] sm:$0xff] %vm673_vm2, %v883_v17  ;;  %v871_v18 = vpop.permute.xlu1 %870  ;;  %v873_v19 = vpop.permute.xlu0 %872 }
 0x275   : > { %v880_v5 = vadd.f32 %v871_v18, %v1865_v32  ;;  %v881_v23 = vadd.f32 %v873_v19, %v1869_v33 }
 0x277   : > { %v884_v25 = vsel %vm668_vm3, %v852_v6, %v880_v5  ;;  %v885_v27 = vsel %vm668_vm3, %v853_v20, %v881_v23 }
 0x278   : > { %888 = vst.msk [vmem:[%s1926_s23 + $0x10] sm:$0xff] %vm673_vm2, %v884_v25  ;;  %889 = vst.msk [vmem:[%s1926_s23 + $0x18] sm:$0xff] %vm673_vm2, %v885_v27  ;;  %v657_v29 = vpop.permute.xlu1 %656  ;;  %v659_v22 = vpop.permute.xlu0 %658  ;;  %s1451_s23 = scalar_lea.vmem %s1941_s10, 512 }
 0x279   : > { %v666_v21 = vadd.f32 %v657_v29, %v642_v28  ;;  %v667_v30 = vadd.f32 %v659_v22, %v643_v36  ;;  %p1452_p10 = scmp.ne.s32.totalorder %s1941_s10, %s1451_s23  ;;  %p1459_p1 = scmp.lt.s32.totalorder %s1457_s19, %s1451_s23 }
 0x27b   : > { %p1453_p11 = pnand %p1452_p10, %p1691_p4  ;;  %p1460_p2 = por %p1459_p1, %p1458_p0 }
 0x27d   : > { %p1454_p13 = pneg %p1453_p11 }
 0x27f   : > { %p1461_p3 = pnand %p1460_p2, %p1454_p13 }
 0x281   : > { %1464 = shalt.err (!%p1461_p3)
}
 0x282   : > { %s1465_s30 = scalar_lea.hbm %s1960_s20, 512  ;;  %s1469_s0 = scalar_lea.hbm %s2103_s6, 1024 }
 0x283   : > { %p1466_p5 = scmp.ne.s32.totalorder %s1960_s20, %s1465_s30  ;;  %p1470_p9 = scmp.lt.s32.totalorder %s1960_s20, %s2103_s6 }
 0x284   : > { %p1471_p12 = scmp.lt.s32.totalorder %s1469_s0, %s1465_s30 }
 0x285   : > { %p1467_p7 = pnand %p1466_p5, %p1691_p4 }
 0x286   : > { %p1472_p10 = por %p1471_p12, %p1470_p9 }
 0x287   : > { %p1468_p6 = pneg %p1467_p7 }
 0x289   : > { %p1473_p11 = pnand %p1472_p10, %p1468_p6 }
 0x28b   : > { %1476 = shalt.err (!%p1473_p11)
}
 0x28c   : > { %s1604_s23 = smov 128   ;;  %s1605_s8 = smov 8  }
 0x28d   : > { %1339 = dma.vmem_to_hbm [thread:$0]  (%p1691_p4), %s1941_s10, 512, %s1960_s20, %s1992_s27, %s1604_s23, %s1604_s23, %s1605_s8  }
 0x28e   : > { %s1477_s1 = scalar_lea.vmem %s1962_s17, 512  ;;  %s1606_s2 = smov [#allocation8]  }
 0x28f   : > { %p1478_p13 = scmp.ne.s32.totalorder %s1962_s17, %s1477_s1  ;;  %s1481_s19 = sshll.u32 %s1606_s2, 4  ;;  %s1482_s19 = int_to_ptr.vmem [resolvable:$false] %s1481_s19 }
 0x290   : > { %s1483_s30 = scalar_lea.vmem %s1482_s19, 1024  ;;  %p1484_p2 = scmp.lt.s32.totalorder %s1962_s17, %s1482_s19 }
 0x291   : > { %p1479_p0 = pnand %p1478_p13, %p1691_p4  ;;  %p1485_p3 = scmp.lt.s32.totalorder %s1483_s30, %s1477_s1 }
 0x293   : > { %p1480_p1 = pneg %p1479_p0  ;;  %p1486_p5 = por %p1485_p3, %p1484_p2 }
 0x295   : > { %p1487_p7 = pnand %p1486_p5, %p1480_p1 }
 0x297   : > { %1490 = shalt.err (!%p1487_p7)
}
 0x298   : > { %s1491_s16 = scalar_lea.hbm %s1973_s18, 512  ;;  %s1495_s21 = scalar_lea.hbm %s2104_s7, 1024 }
 0x299   : > { %p1492_p6 = scmp.ne.s32.totalorder %s1973_s18, %s1491_s16  ;;  %p1496_p10 = scmp.lt.s32.totalorder %s1973_s18, %s2104_s7 }
 0x29a   : > { %p1497_p11 = scmp.lt.s32.totalorder %s1495_s21, %s1491_s16 }
 0x29b   : > { %p1493_p9 = pnand %p1492_p6, %p1691_p4 }
 0x29c   : > { %p1498_p13 = por %p1497_p11, %p1496_p10 }
 0x29d   : > { %p1494_p12 = pneg %p1493_p9 }
 0x29f   : > { %p1499_p0 = pnand %p1498_p13, %p1494_p12 }
 0x2a1   : > { %1502 = shalt.err (!%p1499_p0)
}
 0x2a2   : > { %1340 = dma.vmem_to_hbm [thread:$0]  (%p1691_p4), %s1962_s17, 512, %s1973_s18, %s1992_s27, %s1604_s23, %s1604_s23, %s1605_s8   ;;  %v671_v32 = vsel %vm668_vm3, %v634_v59, %v666_v21  ;;  %v672_v33 = vsel %vm668_vm3, %v635_v60, %v667_v30 }
 0x2a3   : > { %676 = vst.msk [vmem:[%s1915_s22 + $0x10] sm:$0xff] %vm673_vm2, %v671_v32  ;;  %677 = vst.msk [vmem:[%s1915_s22 + $0x18] sm:$0xff] %vm673_vm2, %v672_v33  ;;  %s2117_s1 = sand.u32 1, %s1571_s25   ;;  %s1503_s30 = scalar_lea.vmem %s1975_s15, 512 }
 0x2a4   : > { %s1043_s19 = scalar_lea.sflag [#allocation4], %s2117_s1  ;;  %p1504_p1 = scmp.ne.s32.totalorder %s1975_s15, %s1503_s30 }
 0x2a5   : > { %s1607_s16 = smov [#allocation5]  }
 0x2a6   : > { %p1505_p2 = pnand %p1504_p1, %p1691_p4  ;;  %s1507_s10 = sshll.u32 %s1607_s16, 4  ;;  %s1508_s10 = int_to_ptr.vmem [resolvable:$false] %s1507_s10 }
 0x2a7   : > { %s1509_s20 = scalar_lea.vmem %s1508_s10, 1024  ;;  %p1510_p5 = scmp.lt.s32.totalorder %s1975_s15, %s1508_s10 }
 0x2a8   : > { %p1506_p3 = pneg %p1505_p2  ;;  %p1511_p7 = scmp.lt.s32.totalorder %s1509_s20, %s1503_s30 }
 0x2aa   : > { %p1512_p6 = por %p1511_p7, %p1510_p5 }
 0x2ac   : > { %p1513_p9 = pnand %p1512_p6, %p1506_p3 }
 0x2ae   : > { %1516 = shalt.err (!%p1513_p9)
}
 0x2af   : > { %s1517_s22 = scalar_lea.hbm %s1984_s12, 512  ;;  %s1521_s27 = scalar_lea.hbm %s2102_s5, 1024 }
 0x2b0   : > { %p1518_p12 = scmp.ne.s32.totalorder %s1984_s12, %s1517_s22  ;;  %p1522_p13 = scmp.lt.s32.totalorder %s1984_s12, %s2102_s5 }
 0x2b1   : > { %p1523_p0 = scmp.lt.s32.totalorder %s1521_s27, %s1517_s22 }
 0x2b2   : > { %p1519_p10 = pnand %p1518_p12, %p1691_p4 }
 0x2b3   : > { %p1524_p1 = por %p1523_p0, %p1522_p13 }
 0x2b4   : > { %p1520_p11 = pneg %p1519_p10 }
 0x2b6   : > { %p1525_p2 = pnand %p1524_p1, %p1520_p11 }
 0x2b8   : > { %1528 = shalt.err (!%p1525_p2)
}
 0x2b9   : > { %1338 = dma.vmem_to_hbm [thread:$0]  (%p1691_p4), %s1975_s15, 512, %s1984_s12, %s1043_s19, %s1604_s23, %s1604_s23, %s1605_s8  }
 0x2ba PF: > { %p1360_p3 = scmp.ge.s32.totalorder %s1587_s29, 2  ;;  %s1116_s2 = sand.u32 1, %s1567_s24  }
 0x2bb   : > { %s1117_s1 = scalar_lea.sflag [#allocation4], %s1116_s2 }
 0x2bc   : > { %p1349_p5 = pnand %p1360_p3, %p1700_p8 }
 0x2be   : > { %p1350_p7 = pneg %p1349_p5 }
 0x2c0   : > { %1558 = dma.done.wait (%p1350_p7), %s1117_s1, 512  }
 0x2c1   : > { %1560 = vsyncadd (%p1350_p7), %s1117_s1, 4294966784  ;;  %s2118_s11 = sadd.s32 4294967294, %s1587_s29  }
 0x2c2   : > { %s1125_s30 = sand.u32 1, %s2118_s11  }
 0x2c3   : > { %s1126_s16 = scalar_lea.sflag [#allocation7], %s1125_s30 }
 0x2c4   : > { %1562 = dma.done.wait (%p1350_p7), %s1126_s16, 1024  }
 0x2c5   : > { %1564 = vsyncadd (%p1350_p7), %s1126_s16, 4294966272  ;;  %s25_s29 = sadd.s32 1, %s1587_s29   ;;  %s2119_s24 = smov %s1571_s25 }
 0x2c6   : > { %p22_p4 = scmp.ge.s32.totalorder %s25_s29, 4   ;;  %s2120_s25 = smov %s1575_s26 }
 0x2c7   : > { %s2121_s26 = smov %s1706_s14  ;;  %s2122_s27 = smov %s1583_s28 }
 0x2c8   : > { %s2123_s28 = smov %s2125_s9  ;;  %24 = sbr.rel (!%p22_p4) target bundleno = 11 (0xb), region = 118 }
 0x2cd   :  { %1140 = vsyncpa [#allocation3], 1 }
 0x2ce   :  { %1142 = vsyncpa [#allocation3 + $0x1], 1 }
 0x2cf   :  { %1143 = vsyncpa [#allocation4], 1 }
 0x2d0   :  { %1145 = vsyncpa [#allocation4 + $0x1], 1 }
 0x2d1   :  { %1146 = vsyncpa [#allocation7], 1 }
 0x2d2   :  { %1148 = vsyncpa [#allocation7 + $0x1], 1 }

// kernel: tpu_custom_call.1
= control target key start
LH: loop header
LB: loop body
LE: loop exit
PB: predicated region body
PF: predicated region fallthrough
CT: control target
= control target key end

     0   :  { %s2097_s0 = inlined_call_operand.vmem [shape: f32[2,8,32], index: 0, kind: input, shape index: {}]   ;;  %s2098_s1 = inlined_call_operand.hbm [shape: f32[32,96], index: 1, kind: input, shape index: {}]   ;;  %s2099_s2 = inlined_call_operand.vmem [shape: f32[1,96], index: 2, kind: input, shape index: {}]   ;;  %s2100_s3 = inlined_call_operand.vmem [shape: f32[8,4], index: 3, kind: input, shape index: {}]   ;;  %s2101_s4 = inlined_call_operand.vmem [shape: f32[8,4], index: 4, kind: input, shape index: {}]   ;;  %s2102_s5 = inlined_call_operand.hbm [shape: f32[2,4,8,8], index: 5, kind: output, shape index: {0}]   ;;  %s2103_s6 = inlined_call_operand.hbm [shape: f32[2,4,8,8], index: 6, kind: output, shape index: {1}]   ;;  %s2104_s7 = inlined_call_operand.hbm [shape: f32[2,4,8,8], index: 7, kind: output, shape index: {2}]  }
   0x1   :  { %2107 = sst [smem:[#allocation12_spill]] %s2097_s0 }
   0x2   :  { %2108 = sst [smem:[#allocation13_spill]] %s2098_s1 }
   0x3   :  { %2109 = sst [smem:[#allocation14_spill]] %s2099_s2 }
   0x4   :  { %13 = vsyncpa [#allocation3], 0 }
   0x5   :  { %14 = vsyncpa [#allocation4], 0 }
   0x6   :  { %16 = vsyncpa [#allocation4 + $0x1], 0 }
   0x7   :  { %17 = vsyncpa [#allocation7], 0 }
   0x8   :  { %19 = vsyncpa [#allocation7 + $0x1], 0  ;;  %s1648_s24 = smov 0   ;;  %s1650_s25 = smov 0  }
   0x9   :  { %s1652_s26 = smov 0   ;;  %s1654_s27 = smov 0  }
   0xa   :  { %s1656_s28 = smov 0   ;;  %s1658_s29 = smov 0  }
   0xb LB: > { %s1679_s30 = sadd.s32 4294967295, %s1587_s29   ;;  %s2105_s8 = sadd.s32 4294967294, %s1587_s29   ;;  %s1587_s29 = sphi %s1658_s29, %s25_s29   ;;  %s1583_s28 = sphi %s1656_s28, %s2123_s28   ;;  %s1579_s27 = sphi %s1654_s27, %s2122_s27   ;;  %s1575_s26 = sphi %s1652_s26, %s2121_s26   ;;  %s1571_s25 = sphi %s1650_s25, %s2120_s25   ;;  %s1567_s24 = sphi %s1648_s24, %s2119_s24  }
   0xc   : > { %s37_s9 = sadd.s32 1, %s1583_s28  ;;  %s168_s10 = sadd.s32 1, %s1575_s26 }
   0xd   : > { %p39_p0 = scmp.ge.s32.totalorder %s37_s9, 2  ;;  %p178_p1 = scmp.ne.s32.totalorder %s1575_s26, %s1571_s25 }
   0xe   : > { %p179_p2 = scmp.eq.s32.totalorder %s1679_s30, 1  ;;  %p184_p3 = scmp.ne.s32.totalorder %s1571_s25, %s1567_s24 }
   0xf   : > { %s2125_s9 = smov (%p39_p0, %s37_s9), 0  ;;  %p185_p5 = scmp.eq.s32.totalorder %s2105_s8, 1 }
  0x10   : > { %p1691_p4 = por %p179_p2, %p178_p1  ;;  %s163_s12 = ssub.s32 %s1583_s28, %s2125_s9 }
  0x11   : > { %p1285_p6 = scmp.ge.s32.totalorder %s1587_s29, 1  ;;  %p166_p7 = scmp.eq.s32.totalorder %s163_s12, 0 }
  0x12   : > { %p1700_p8 = por %p185_p5, %p184_p3  ;;  %p248_p9 = scmp.lt.s32.totalorder %s1587_s29, 3 }
  0x13   : > { %s1706_s14 = scalar_select %p166_p7, %s1575_s26, %s168_s10  }
  0x14   : > { %p1708_p10 = pnand %p1285_p6, %p248_p9  ;;  %p1358_p11 = scmp.eq.s32.totalorder %s1679_s30, 0 }
  0x15   : > { %s1589_s16 = smov [#allocation2]  }
  0x16   : > { %p1344_p12 = pneg %p1708_p10  ;;  %s260_s17 = sshll.u32 %s1589_s16, 4  ;;  %s261_s17 = int_to_ptr.vmem [resolvable:$true] %s260_s17 }
  0x17   : > { %s1436_s18 = scalar_lea.vmem %s261_s17, 512  ;;  %p1444_p5 = scmp.lt.s32.totalorder %s261_s17, %s261_s17 }
  0x18   : > { %p1345_p13 = pnand %p1358_p11, %p1344_p12  ;;  %p1437_p1 = scmp.ne.s32.totalorder %s261_s17, %s1436_s18 }
  0x19   : > { %p1445_p7 = scmp.lt.s32.totalorder %s1436_s18, %s1436_s18 }
  0x1a   : > { %p1427_p0 = pneg %p1345_p13 }
  0x1b   : > { %p1446_p6 = por %p1445_p7, %p1444_p5 }
  0x1c   : > { %p1439_p2 = pnand %p1437_p1, %p1427_p0 }
  0x1e   : > { %p1440_p3 = pneg %p1439_p2 }
  0x20   : > { %p1447_p9 = pnand %p1446_p6, %p1440_p3 }
  0x22   : > { %1450 = shalt.err (!%p1447_p9)
}
  0x23   : > { %s1590_s19 = smov 128   ;;  %s1591_s20 = smov 8  }
  0x24   : > { %s2113_s1 = sld [smem:[#allocation13_spill]] }
  0x26   : > { %303 = sbr.rel (%p1708_p10) target bundleno = 698 (0x2ba), region = 40 }
  0x2a   : > { %1347 = dma.hbm_to_vmem [thread:$0]  (!%p1345_p13), %s2113_s1, 512, %s261_s17, [#allocation3], %s1590_s19, %s1590_s19, %s1591_s20  }
  0x2b   : > { %1554 = dma.done.wait (%p1358_p11), [#allocation3], 512  }
  0x2c   : > { %1556 = vsyncadd (%p1358_p11), [#allocation3], 4294966784  ;;  %p355_p12 = scmp.lt.s32.totalorder %s1579_s27, 1  ;;  %v1592_v0 = vmov 0.0   ;;  %vm1593_vm0 = vmmov 0   ;;  %v374_v1 = vld [vmem:[#allocation2 + $0x18] sm:$0xff]  ;;  %v473_v12 = vlaneseq }
  0x2d   : > { %1323 = vmatprep.subr.mxu0 %v1592_v0  ;;  %1331 = vmatprep.mubr.msk.f32.mxu0 %vm1593_vm0, %v1592_v0  ;;  %v373_v2 = vld [vmem:[#allocation2 + $0x10] sm:$0xff]  ;;  %v372_v3 = vld [vmem:[#allocation2 + $0x8] sm:$0xff]  ;;  %s2114_s0 = sld [smem:[#allocation12_spill]]  ;;  %v371_v4 = vld [vmem:[#allocation2] sm:$0xff]  ;;  %vm382_vm1 = vcmask 261120   ;;  %s1594_s19 = smov 104  }
  0x2e   : > { %s356_s23 = scalar_select %p355_p12, %s1579_s27, 1  ;;  %1324 = vmatpush3.msra.mxu0 %v374_v1  ;;  %v1598_v10 = vmov 1983009808   ;;  %v1599_v13 = vmov 1934713408   ;;  %v474_v16 = vshrl.u32 %v473_v12, 7 }
  0x2f   : > { %1325 = vmatprep.subr.mxu0 %v1592_v0  ;;  %s2115_s2 = sld [smem:[#allocation14_spill]]  ;;  %s1595_s20 = smov 120   ;;  %v471_v11 = vunpack.c.l.s4 %v1598_v10  ;;  %v503_v14 = vunpack.c.l.s4 %v1599_v13  ;;  %v1745_v31 = vld [vmem:[%s2101_s4] sm:$0xff]  ;;  %vm673_vm2 = vcmask 64512   ;;  %vm668_vm3 = vcmask 31744  }
  0x30   : > { %s1295_s10 = sshll.u32 %s356_s23, 3  ;;  %1326 = vmatpush3.msra.mxu0 %v373_v2  ;;  %s1596_s21 = smov 96   ;;  %v1752_v36 = vld [vmem:[%s2100_s3] sm:$0xff] }
  0x31   : > { %1327 = vmatprep.subr.mxu0 %v1592_v0  ;;  %s1597_s22 = smov 112   ;;  %v472_v15 = vunpack.c.0.s8 %v471_v11  ;;  %v504_v21 = vunpack.c.0.s8 %v503_v14  ;;  %s1600_s12 = smov 64  }
  0x32   : > { %1328 = vmatpush3.msra.mxu0 %v372_v3  ;;  %s1601_s15 = smov 4   ;;  %s1602_s18 = smov 124  }
  0x33   : > { %s361_s16 = scalar_lea.vmem %s2114_s0, %s1295_s10  ;;  %1329 = vmatprep.subr.mxu0 %v1592_v0  ;;  %v1734_v22 = vsub.s32 %v472_v15, %v474_v16  ;;  %v1736_v26 = vsub.s32 %v504_v21, %v474_v16  ;;  %s1603_s0 = smov [#allocation6]  }
  0x34   : > { %v370_v5 = vld [vmem:[%s361_s16] sm:$0xff]  ;;  %1330 = vmatpush3.msra.mxu0 %v371_v4  ;;  %s1315_s16 = sshll.u32 %s1579_s27, 9  ;;  %s1455_s8 = sshll.u32 %s1603_s0, 4  ;;  %s1456_s8 = int_to_ptr.vmem [resolvable:$false] %s1455_s8 }
  0x35   : > { %1332 = vmatmul.mubr.msk.f32.vlgmr.msra.gmra.mxu0 %vm382_vm1, %v370_v5  ;;  %v1296_v6 = vld [vmem:[%s2115_s2] ss:$0 sm:$0xff] }
  0xf5   : > { %v452_v7 = vpop.f32.mrf.mxu0 }
  0xf6   : > { %v453_v8 = vadd.f32 %v1296_v6, %v452_v7 }
  0xf7   : > { %v1333_v9 = vpop.f32.mrf.mxu0 }
  0xf8   : > { %465 = vrot.lane.b32.xlu1 %v453_v8, %s1594_s19  ;;  %459 = vrot.lane.b32.xlu0 %v453_v8, %s1595_s20  ;;  %s2106_s19 = sand.u32 1, %s1571_s25  }
  0xf9   : > { %s1857_s20 = sshll.u32 %s2106_s19, 5  ;;  %s1457_s19 = scalar_lea.vmem %s1456_s8, 1024 }
  0xfa   : > { %s1926_s23 = scalar_lea.vmem [#allocation6], %s1857_s20 }
  0xfb   : > { %s1084_s10 = sshll.u32 %s1926_s23, 4  ;;  %s1941_s10 = int_to_ptr.vmem [resolvable:$true] %s1084_s10 }
  0xfc   : > { %678 = vrot.lane.b32.xlu1 %v453_v8, %s1596_s21  ;;  %462 = vrot.lane.b32.xlu0 %v453_v8, %s1597_s22  ;;  %s1915_s22 = scalar_lea.vmem [#allocation5], %s1857_s20  ;;  %p1458_p0 = scmp.lt.s32.totalorder %s1941_s10, %s1456_s8 }
 0x16a   : > { %v466_v17 = vpop.permute.xlu1 %465  ;;  %v460_v18 = vpop.permute.xlu0 %459 }
 0x16b   : > { %v484_v19 = vcombine.low %v460_v18, %v466_v17  ;;  %v485_v20 = vcombine.high %v460_v18, %v466_v17  ;;  %680 = vrot.lane.b32.xlu0 %v460_v18, %s1596_s21 }
 0x16d   : > { %v492_v27 = vrot.slane %v484_v19, %v1734_v22  ;;  %v499_v28 = vrot.slane %v485_v20, %v1734_v22 }
 0x16e   : > { %v463_v23 = vpop.permute.xlu0 %462  ;;  %v679_v61 = vpop.permute.xlu1 %678 }
 0x16f   : > { %v468_v24 = vcombine.low %v453_v8, %v463_v23  ;;  %v469_v25 = vcombine.high %v453_v8, %v463_v23  ;;  %684 = vrot.lane.b32.xlu0 %v466_v17, %s1596_s21  ;;  %682 = vrot.lane.b32.xlu1 %v463_v23, %s1596_s21  ;;  %s1882_s21 = scalar_lea.vmem [#allocation8], %s1857_s20  ;;  %s1960_s20 = scalar_lea.hbm %s2103_s6, %s1315_s16 }
 0x170   : > { %s1101_s17 = sshll.u32 %s1882_s21, 4  ;;  %s1962_s17 = int_to_ptr.vmem [resolvable:$true] %s1101_s17 }
 0x171   : > { %v476_v29 = vrot.slane %v468_v24, %v1734_v22  ;;  %v483_v30 = vrot.slane %v469_v25, %v1734_v22 }
 0x173   : > { %v500_v32 = vcombine.low %v476_v29, %v492_v27  ;;  %v501_v33 = vcombine.high %v476_v29, %v492_v27  ;;  %v516_v34 = vcombine.low %v483_v30, %v499_v28  ;;  %v517_v35 = vcombine.high %v483_v30, %v499_v28  ;;  %890 = vrot.lane.b32.xlu0 %v453_v8, %s1600_s12 }
 0x174   : > { %609 = vrot.lane.b32.xlu1 %v1745_v31, %s1601_s15 }
 0x175   : > { %v508_v37 = vrot.slane %v500_v32, %v1736_v26  ;;  %v515_v38 = vrot.slane %v501_v33, %v1736_v26  ;;  %v524_v39 = vrot.slane %v516_v34, %v1736_v26  ;;  %v531_v40 = vrot.slane %v517_v35, %v1736_v26 }
 0x177   : > { %v536_v41 = vcombine.low %v508_v37, %v515_v38  ;;  %v1298_v42 = vcombine.high %v508_v37, %v515_v38  ;;  %v552_v43 = vcombine.low %v524_v39, %v531_v40  ;;  %v1299_v44 = vcombine.high %v524_v39, %v531_v40  ;;  %637 = vrot.lane.b32.xlu0 %v1752_v36, %s1601_s15 }
 0x178   : > { %892 = vrot.lane.b32.xlu1 %v460_v18, %s1600_s12 }
 0x179   : > { %v543_v45 = vrot.slane %v536_v41, %v1734_v22  ;;  %v551_v46 = vrot.slane %v1298_v42, %v1734_v22  ;;  %v559_v47 = vrot.slane %v552_v43, %v1734_v22  ;;  %v567_v48 = vrot.slane %v1299_v44, %v1734_v22 }
 0x17b   : > { %894 = vrot.lane.b32.xlu0 %v463_v23, %s1600_s12  ;;  %v568_v49 = vcombine.low %v543_v45, %v551_v46  ;;  %v584_v50 = vcombine.low %v559_v47, %v567_v48  ;;  %v569_v51 = vcombine.high %v543_v45, %v551_v46  ;;  %v585_v52 = vcombine.high %v559_v47, %v567_v48 }
 0x17c   : > { %896 = vrot.lane.b32.xlu1 %v466_v17, %s1600_s12  ;;  %s1984_s12 = scalar_lea.hbm %s2102_s5, %s1315_s16 }
 0x17d   : > { %v576_v53 = vrot.slane %v568_v49, %v1736_v26  ;;  %v592_v54 = vrot.slane %v584_v50, %v1736_v26  ;;  %v583_v55 = vrot.slane %v569_v51, %v1736_v26  ;;  %v599_v56 = vrot.slane %v585_v52, %v1736_v26 }
 0x17f   : > { %v1768_v57 = vcombine.high %v576_v53, %v592_v54  ;;  %v1770_v58 = vcombine.low %v576_v53, %v592_v54  ;;  %v1772_v59 = vcombine.high %v583_v55, %v599_v56  ;;  %v1774_v60 = vcombine.low %v583_v55, %v599_v56 }
 0x181   : > { %v645_v38 = vmul.f32 %v1768_v57, %v1745_v31  ;;  %v644_v39 = vmul.f32 %v1770_v58, %v1745_v31 }
 0x1dd   : > { %v681_v62 = vpop.permute.xlu0 %680 }
 0x1e1   : > { %v683_v63 = vpop.permute.xlu1 %682  ;;  %v685_v0 = vpop.permute.xlu0 %684 }
 0x1e2   : > { %v690_v1 = vcombine.low %v679_v61, %v683_v63  ;;  %v691_v2 = vcombine.high %v679_v61, %v683_v63  ;;  %v706_v3 = vcombine.low %v681_v62, %v685_v0  ;;  %v707_v4 = vcombine.high %v681_v62, %v685_v0 }
 0x1e4   : > { %v698_v5 = vrot.slane %v690_v1, %v1734_v22  ;;  %v705_v6 = vrot.slane %v691_v2, %v1734_v22  ;;  %v714_v7 = vrot.slane %v706_v3, %v1734_v22  ;;  %v721_v8 = vrot.slane %v707_v4, %v1734_v22 }
 0x1e5   : > { %v891_v9 = vpop.permute.xlu0 %890 }
 0x1e6   : > { %v722_v10 = vcombine.low %v698_v5, %v714_v7  ;;  %v723_v11 = vcombine.high %v698_v5, %v714_v7  ;;  %v738_v12 = vcombine.low %v705_v6, %v721_v8  ;;  %v739_v13 = vcombine.high %v705_v6, %v721_v8  ;;  %v1780_v14 = vpop.permute.xlu1 %609 }
 0x1e7   : > { %v613_v15 = vmul.f32 %v1780_v14, %v1768_v57  ;;  %v612_v16 = vmul.f32 %v1780_v14, %v1770_v58  ;;  %v615_v29 = vmul.f32 %v1780_v14, %v1772_v59  ;;  %v614_v30 = vmul.f32 %v1780_v14, %v1774_v60 }
 0x1e8   : > { %v730_v17 = vrot.slane %v722_v10, %v1736_v26  ;;  %v737_v18 = vrot.slane %v723_v11, %v1736_v26  ;;  %v746_v19 = vrot.slane %v738_v12, %v1736_v26  ;;  %v753_v20 = vrot.slane %v739_v13, %v1736_v26 }
 0x1e9   : > { %622 = vrot.lane.b32.xlu0 %v613_v15, %s1602_s18  ;;  %620 = vrot.lane.b32.xlu1 %v612_v16, %s1602_s18  ;;  %v1792_v21 = vpop.permute.xlu0 %637 }
 0x1ea   : > { %v758_v23 = vcombine.low %v730_v17, %v737_v18  ;;  %v1300_v24 = vcombine.high %v730_v17, %v737_v18  ;;  %v774_v25 = vcombine.low %v746_v19, %v753_v20  ;;  %v1301_v27 = vcombine.high %v746_v19, %v753_v20  ;;  %v893_v28 = vpop.permute.xlu1 %892 }
 0x1ec   : > { %v765_v32 = vrot.slane %v758_v23, %v1734_v22  ;;  %v773_v33 = vrot.slane %v1300_v24, %v1734_v22  ;;  %v781_v34 = vrot.slane %v774_v25, %v1734_v22  ;;  %v789_v35 = vrot.slane %v1301_v27, %v1734_v22 }
 0x1ed   : > { %626 = vrot.lane.b32.xlu0 %v615_v29, %s1602_s18  ;;  %624 = vrot.lane.b32.xlu1 %v614_v30, %s1602_s18  ;;  %v895_v37 = vpop.permute.xlu0 %894 }
 0x1ee   : > { %v790_v40 = vcombine.low %v765_v32, %v773_v33  ;;  %v791_v41 = vcombine.high %v765_v32, %v773_v33  ;;  %v806_v42 = vcombine.low %v781_v34, %v789_v35  ;;  %v807_v43 = vcombine.high %v781_v34, %v789_v35  ;;  %v897_v44 = vpop.permute.xlu1 %896 }
 0x1ef   : > { %v918_v45 = vcombine.low %v893_v28, %v897_v44  ;;  %v919_v46 = vcombine.high %v893_v28, %v897_v44  ;;  %v902_v47 = vcombine.low %v891_v9, %v895_v37  ;;  %v903_v48 = vcombine.high %v891_v9, %v895_v37 }
 0x1f0   : > { %v798_v49 = vrot.slane %v790_v40, %v1736_v26  ;;  %v814_v50 = vrot.slane %v806_v42, %v1736_v26  ;;  %v805_v51 = vrot.slane %v791_v41, %v1736_v26  ;;  %v821_v52 = vrot.slane %v807_v43, %v1736_v26 }
 0x1f1   : > { %v926_v53 = vrot.slane %v918_v45, %v1734_v22  ;;  %v933_v54 = vrot.slane %v919_v46, %v1734_v22  ;;  %v910_v55 = vrot.slane %v902_v47, %v1734_v22  ;;  %v917_v56 = vrot.slane %v903_v48, %v1734_v22  ;;  %654 = vrot.lane.b32.xlu0 %v645_v38, %s1601_s15 }
 0x1f2   : > { %652 = vrot.lane.b32.xlu1 %v644_v39, %s1601_s15  ;;  %v1818_v61 = vcombine.high %v798_v49, %v814_v50  ;;  %v1820_v62 = vcombine.low %v798_v49, %v814_v50  ;;  %v1826_v5 = vcombine.high %v805_v51, %v821_v52  ;;  %v1828_v6 = vcombine.low %v805_v51, %v821_v52 }
 0x1f3   : > { %v934_v63 = vcombine.low %v910_v55, %v926_v53  ;;  %v935_v0 = vcombine.high %v910_v55, %v926_v53  ;;  %v950_v1 = vcombine.low %v917_v56, %v933_v54  ;;  %v951_v2 = vcombine.high %v917_v56, %v933_v54 }
 0x1f4   : > { %v831_v3 = vmul.f32 %v1818_v61, %v1780_v14  ;;  %v830_v4 = vmul.f32 %v1820_v62, %v1780_v14  ;;  %v833_v16 = vmul.f32 %v1826_v5, %v1780_v14  ;;  %v832_v17 = vmul.f32 %v1828_v6, %v1780_v14 }
 0x1f5   : > { %v942_v7 = vrot.slane %v934_v63, %v1736_v26  ;;  %v949_v8 = vrot.slane %v935_v0, %v1736_v26  ;;  %v958_v9 = vrot.slane %v950_v1, %v1736_v26  ;;  %v965_v10 = vrot.slane %v951_v2, %v1736_v26 }
 0x1f6   : > { %840 = vrot.lane.b32.xlu0 %v831_v3, %s1602_s18  ;;  %838 = vrot.lane.b32.xlu1 %v830_v4, %s1602_s18  ;;  %v1849_v24 = vmul.f32 %v1820_v62, %v1792_v21  ;;  %v1853_v14 = vmul.f32 %v1818_v61, %v1792_v21  ;;  %v858_v30 = vmul.f32 %v1820_v62, %v1745_v31 }
 0x1f7   : > { %v970_v11 = vcombine.low %v942_v7, %v949_v8  ;;  %v1302_v12 = vcombine.high %v942_v7, %v949_v8  ;;  %v986_v13 = vcombine.low %v958_v9, %v965_v10  ;;  %v1303_v15 = vcombine.high %v958_v9, %v965_v10 }
 0x1f8   : > { %v1865_v32 = vmul.f32 %v1828_v6, %v1792_v21  ;;  %v1869_v33 = vmul.f32 %v1826_v5, %v1792_v21  ;;  %v861_v43 = vmul.f32 %v1826_v5, %v1745_v31  ;;  %v860_v44 = vmul.f32 %v1828_v6, %v1745_v31 }
 0x1f9   : > { %v977_v18 = vrot.slane %v970_v11, %v1734_v22  ;;  %v985_v19 = vrot.slane %v1302_v12, %v1734_v22  ;;  %v993_v20 = vrot.slane %v986_v13, %v1734_v22  ;;  %v1001_v23 = vrot.slane %v1303_v15, %v1734_v22 }
 0x1fa   : > { %844 = vrot.lane.b32.xlu0 %v833_v16, %s1602_s18  ;;  %842 = vrot.lane.b32.xlu1 %v832_v17, %s1602_s18  ;;  %v859_v22 = vmul.f32 %v1818_v61, %v1745_v31  ;;  %v646_v45 = vmul.f32 %v1774_v60, %v1745_v31  ;;  %v605_v50 = vmul.f32 %v1768_v57, %v1752_v36  ;;  %s1973_s18 = scalar_lea.hbm %s2104_s7, %s1315_s16 }
 0x1fb   : > { %v1002_v25 = vcombine.low %v977_v18, %v985_v19  ;;  %v1003_v27 = vcombine.high %v977_v18, %v985_v19  ;;  %v1018_v28 = vcombine.low %v993_v20, %v1001_v23  ;;  %v1019_v29 = vcombine.high %v993_v20, %v1001_v23 }
 0x1fc   : > { %v641_v51 = vmul.f32 %v1792_v21, %v1768_v57  ;;  %v640_v52 = vmul.f32 %v1792_v21, %v1770_v58  ;;  %v826_v7 = vmul.f32 %v1820_v62, %v1752_v36  ;;  %v827_v8 = vmul.f32 %v1818_v61, %v1752_v36 }
 0x1fd   : > { %v1010_v34 = vrot.slane %v1002_v25, %v1736_v26  ;;  %v1017_v35 = vrot.slane %v1003_v27, %v1736_v26  ;;  %v1026_v37 = vrot.slane %v1018_v28, %v1736_v26  ;;  %v1033_v38 = vrot.slane %v1019_v29, %v1736_v26 }
 0x1fe   : > { %868 = vrot.lane.b32.xlu0 %v859_v22, %s1601_s15  ;;  %866 = vrot.lane.b32.xlu1 %v858_v30, %s1601_s15  ;;  %v647_v26 = vmul.f32 %v1772_v59, %v1745_v31  ;;  %v604_v31 = vmul.f32 %v1770_v58, %v1752_v36  ;;  %v828_v61 = vmul.f32 %v1828_v6, %v1752_v36 }
 0x1ff   : > { %v1034_v39 = vcombine.low %v1010_v34, %v1026_v37  ;;  %v1035_v40 = vcombine.high %v1010_v34, %v1026_v37  ;;  %v1036_v41 = vcombine.low %v1017_v35, %v1033_v38  ;;  %v1037_v42 = vcombine.high %v1017_v35, %v1033_v38 }
 0x200   : > { %v829_v62 = vmul.f32 %v1826_v5, %v1752_v36  ;;  %v642_v28 = vmul.f32 %v1792_v21, %v1774_v60 }
 0x201   : > { %1038 = vst.msk [vmem:[%s1882_s21] sm:$0xff] %vm673_vm2, %v1034_v39  ;;  %1039 = vst.msk [vmem:[%s1882_s21 + $0x8] sm:$0xff] %vm673_vm2, %v1035_v40 }
 0x202   : > { %1040 = vst.msk [vmem:[%s1882_s21 + $0x10] sm:$0xff] %vm673_vm2, %v1036_v41  ;;  %1041 = vst.msk [vmem:[%s1882_s21 + $0x18] sm:$0xff] %vm673_vm2, %v1037_v42  ;;  %872 = vrot.lane.b32.xlu0 %v861_v43, %s1601_s15  ;;  %870 = vrot.lane.b32.xlu1 %v860_v44, %s1601_s15  ;;  %s2116_s21 = sand.u32 1, %s1679_s30  }
 0x203   : > { %s1992_s27 = scalar_lea.sflag [#allocation7], %s2116_s21 }
 0x206   : > { %658 = vrot.lane.b32.xlu0 %v647_v26, %s1601_s15  ;;  %656 = vrot.lane.b32.xlu1 %v646_v45, %s1601_s15  ;;  %s1067_s15 = sshll.u32 %s1915_s22, 4  ;;  %s1975_s15 = int_to_ptr.vmem [resolvable:$true] %s1067_s15 }
 0x25b   : > { %v621_v46 = vpop.permute.xlu1 %620  ;;  %v623_v47 = vpop.permute.xlu0 %622 }
 0x25c   : > { %v633_v54 = vsub.f32 %v605_v50, %v623_v47  ;;  %v632_v63 = vsub.f32 %v604_v31, %v621_v46 }
 0x25f   : > { %v1900_v48 = vpop.permute.xlu1 %624  ;;  %v1902_v49 = vpop.permute.xlu0 %626 }
 0x263   : > { %v655_v53 = vpop.permute.xlu0 %654 }
 0x264   : > { %v653_v55 = vpop.permute.xlu1 %652  ;;  %v665_v56 = vadd.f32 %v655_v53, %v641_v51 }
 0x265   : > { %v664_v0 = vadd.f32 %v653_v55, %v640_v52 }
 0x266   : > { %v670_v1 = vsel %vm668_vm3, %v633_v54, %v665_v56 }
 0x267   : > { %v669_v2 = vsel %vm668_vm3, %v632_v63, %v664_v0  ;;  %675 = vst.msk [vmem:[%s1915_s22 + $0x8] sm:$0xff] %vm673_vm2, %v670_v1 }
 0x268   : > { %674 = vst.msk [vmem:[%s1915_s22] sm:$0xff] %vm673_vm2, %v669_v2  ;;  %v839_v57 = vpop.permute.xlu1 %838  ;;  %v841_v58 = vpop.permute.xlu0 %840 }
 0x269   : > { %v850_v11 = vsub.f32 %v826_v7, %v839_v57  ;;  %v851_v12 = vsub.f32 %v827_v8, %v841_v58 }
 0x26c   : > { %v843_v3 = vpop.permute.xlu1 %842  ;;  %v845_v4 = vpop.permute.xlu0 %844 }
 0x26d   : > { %v852_v6 = vsub.f32 %v828_v61, %v843_v3  ;;  %v853_v20 = vsub.f32 %v829_v62, %v845_v4 }
 0x270   : > { %v867_v9 = vpop.permute.xlu1 %866  ;;  %v869_v10 = vpop.permute.xlu0 %868 }
 0x271   : > { %v878_v13 = vadd.f32 %v867_v9, %v1849_v24  ;;  %v879_v15 = vadd.f32 %v869_v10, %v1853_v14  ;;  %v1951_v24 = vmul.f32 %v1774_v60, %v1752_v36  ;;  %v1955_v14 = vmul.f32 %v1772_v59, %v1752_v36 }
 0x272   : > { %v643_v36 = vmul.f32 %v1792_v21, %v1772_v59 }
 0x273   : > { %v882_v16 = vsel %vm668_vm3, %v850_v11, %v878_v13  ;;  %v883_v17 = vsel %vm668_vm3, %v851_v12, %v879_v15  ;;  %v634_v59 = vsub.f32 %v1951_v24, %v1900_v48  ;;  %v635_v60 = vsub.f32 %v1955_v14, %v1902_v49 }
 0x274   : > { %886 = vst.msk [vmem:[%s1926_s23] sm:$0xff] %vm673_vm2, %v882_v16  ;;  %887 = vst.msk [vmem:[%s1926_s23 + $0x8] sm:$0xff] %vm673_vm2, %v883_v17  ;;  %v871_v18 = vpop.permute.xlu1 %870  ;;  %v873_v19 = vpop.permute.xlu0 %872 }
 0x275   : > { %v880_v5 = vadd.f32 %v871_v18, %v1865_v32  ;;  %v881_v23 = vadd.f32 %v873_v19, %v1869_v33 }
 0x277   : > { %v884_v25 = vsel %vm668_vm3, %v852_v6, %v880_v5  ;;  %v885_v27 = vsel %vm668_vm3, %v853_v20, %v881_v23 }
 0x278   : > { %888 = vst.msk [vmem:[%s1926_s23 + $0x10] sm:$0xff] %vm673_vm2, %v884_v25  ;;  %889 = vst.msk [vmem:[%s1926_s23 + $0x18] sm:$0xff] %vm673_vm2, %v885_v27  ;;  %v657_v29 = vpop.permute.xlu1 %656  ;;  %v659_v22 = vpop.permute.xlu0 %658  ;;  %s1451_s23 = scalar_lea.vmem %s1941_s10, 512 }
 0x279   : > { %v666_v21 = vadd.f32 %v657_v29, %v642_v28  ;;  %v667_v30 = vadd.f32 %v659_v22, %v643_v36  ;;  %p1452_p10 = scmp.ne.s32.totalorder %s1941_s10, %s1451_s23  ;;  %p1459_p1 = scmp.lt.s32.totalorder %s1457_s19, %s1451_s23 }
 0x27b   : > { %p1453_p11 = pnand %p1452_p10, %p1691_p4  ;;  %p1460_p2 = por %p1459_p1, %p1458_p0 }
 0x27d   : > { %p1454_p13 = pneg %p1453_p11 }
 0x27f   : > { %p1461_p3 = pnand %p1460_p2, %p1454_p13 }
 0x281   : > { %1464 = shalt.err (!%p1461_p3)
}
 0x282   : > { %s1465_s30 = scalar_lea.hbm %s1960_s20, 512  ;;  %s1469_s0 = scalar_lea.hbm %s2103_s6, 1024 }
 0x283   : > { %p1466_p5 = scmp.ne.s32.totalorder %s1960_s20, %s1465_s30  ;;  %p1470_p9 = scmp.lt.s32.totalorder %s1960_s20, %s2103_s6 }
 0x284   : > { %p1471_p12 = scmp.lt.s32.totalorder %s1469_s0, %s1465_s30 }
 0x285   : > { %p1467_p7 = pnand %p1466_p5, %p1691_p4 }
 0x286   : > { %p1472_p10 = por %p1471_p12, %p1470_p9 }
 0x287   : > { %p1468_p6 = pneg %p1467_p7 }
 0x289   : > { %p1473_p11 = pnand %p1472_p10, %p1468_p6 }
 0x28b   : > { %1476 = shalt.err (!%p1473_p11)
}
 0x28c   : > { %s1604_s23 = smov 128   ;;  %s1605_s8 = smov 8  }
 0x28d   : > { %1339 = dma.vmem_to_hbm [thread:$0]  (%p1691_p4), %s1941_s10, 512, %s1960_s20, %s1992_s27, %s1604_s23, %s1604_s23, %s1605_s8  }
 0x28e   : > { %s1477_s1 = scalar_lea.vmem %s1962_s17, 512  ;;  %s1606_s2 = smov [#allocation8]  }
 0x28f   : > { %p1478_p13 = scmp.ne.s32.totalorder %s1962_s17, %s1477_s1  ;;  %s1481_s19 = sshll.u32 %s1606_s2, 4  ;;  %s1482_s19 = int_to_ptr.vmem [resolvable:$false] %s1481_s19 }
 0x290   : > { %s1483_s30 = scalar_lea.vmem %s1482_s19, 1024  ;;  %p1484_p2 = scmp.lt.s32.totalorder %s1962_s17, %s1482_s19 }
 0x291   : > { %p1479_p0 = pnand %p1478_p13, %p1691_p4  ;;  %p1485_p3 = scmp.lt.s32.totalorder %s1483_s30, %s1477_s1 }
 0x293   : > { %p1480_p1 = pneg %p1479_p0  ;;  %p1486_p5 = por %p1485_p3, %p1484_p2 }
 0x295   : > { %p1487_p7 = pnand %p1486_p5, %p1480_p1 }
 0x297   : > { %1490 = shalt.err (!%p1487_p7)
}
 0x298   : > { %s1491_s16 = scalar_lea.hbm %s1973_s18, 512  ;;  %s1495_s21 = scalar_lea.hbm %s2104_s7, 1024 }
 0x299   : > { %p1492_p6 = scmp.ne.s32.totalorder %s1973_s18, %s1491_s16  ;;  %p1496_p10 = scmp.lt.s32.totalorder %s1973_s18, %s2104_s7 }
 0x29a   : > { %p1497_p11 = scmp.lt.s32.totalorder %s1495_s21, %s1491_s16 }
 0x29b   : > { %p1493_p9 = pnand %p1492_p6, %p1691_p4 }
 0x29c   : > { %p1498_p13 = por %p1497_p11, %p1496_p10 }
 0x29d   : > { %p1494_p12 = pneg %p1493_p9 }
 0x29f   : > { %p1499_p0 = pnand %p1498_p13, %p1494_p12 }
 0x2a1   : > { %1502 = shalt.err (!%p1499_p0)
}
 0x2a2   : > { %1340 = dma.vmem_to_hbm [thread:$0]  (%p1691_p4), %s1962_s17, 512, %s1973_s18, %s1992_s27, %s1604_s23, %s1604_s23, %s1605_s8   ;;  %v671_v32 = vsel %vm668_vm3, %v634_v59, %v666_v21  ;;  %v672_v33 = vsel %vm668_vm3, %v635_v60, %v667_v30 }
 0x2a3   : > { %676 = vst.msk [vmem:[%s1915_s22 + $0x10] sm:$0xff] %vm673_vm2, %v671_v32  ;;  %677 = vst.msk [vmem:[%s1915_s22 + $0x18] sm:$0xff] %vm673_vm2, %v672_v33  ;;  %s2117_s1 = sand.u32 1, %s1571_s25   ;;  %s1503_s30 = scalar_lea.vmem %s1975_s15, 512 }
 0x2a4   : > { %s1043_s19 = scalar_lea.sflag [#allocation4], %s2117_s1  ;;  %p1504_p1 = scmp.ne.s32.totalorder %s1975_s15, %s1503_s30 }
 0x2a5   : > { %s1607_s16 = smov [#allocation5]  }
 0x2a6   : > { %p1505_p2 = pnand %p1504_p1, %p1691_p4  ;;  %s1507_s10 = sshll.u32 %s1607_s16, 4  ;;  %s1508_s10 = int_to_ptr.vmem [resolvable:$false] %s1507_s10 }
 0x2a7   : > { %s1509_s20 = scalar_lea.vmem %s1508_s10, 1024  ;;  %p1510_p5 = scmp.lt.s32.totalorder %s1975_s15, %s1508_s10 }
 0x2a8   : > { %p1506_p3 = pneg %p1505_p2  ;;  %p1511_p7 = scmp.lt.s32.totalorder %s1509_s20, %s1503_s30 }
 0x2aa   : > { %p1512_p6 = por %p1511_p7, %p1510_p5 }
 0x2ac   : > { %p1513_p9 = pnand %p1512_p6, %p1506_p3 }
 0x2ae   : > { %1516 = shalt.err (!%p1513_p9)
}
 0x2af   : > { %s1517_s22 = scalar_lea.hbm %s1984_s12, 512  ;;  %s1521_s27 = scalar_lea.hbm %s2102_s5, 1024 }
 0x2b0   : > { %p1518_p12 = scmp.ne.s32.totalorder %s1984_s12, %s1517_s22  ;;  %p1522_p13 = scmp.lt.s32.totalorder %s1984_s12, %s2102_s5 }
 0x2b1   : > { %p1523_p0 = scmp.lt.s32.totalorder %s1521_s27, %s1517_s22 }
 0x2b2   : > { %p1519_p10 = pnand %p1518_p12, %p1691_p4 }
 0x2b3   : > { %p1524_p1 = por %p1523_p0, %p1522_p13 }
 0x2b4   : > { %p1520_p11 = pneg %p1519_p10 }
 0x2b6   : > { %p1525_p2 = pnand %p1524_p1, %p1520_p11 }
 0x2b8   : > { %1528 = shalt.err (!%p1525_p2)
}
 0x2b9   : > { %1338 = dma.vmem_to_hbm [thread:$0]  (%p1691_p4), %s1975_s15, 512, %s1984_s12, %s1043_s19, %s1604_s23, %s1604_s23, %s1605_s8  }
 0x2ba PF: > { %p1360_p3 = scmp.ge.s32.totalorder %s1587_s29, 2  ;;  %s1116_s2 = sand.u32 1, %s1567_s24  }
 0x2bb   : > { %s1117_s1 = scalar_lea.sflag [#allocation4], %s1116_s2 }
 0x2bc   : > { %p1349_p5 = pnand %p1360_p3, %p1700_p8 }
 0x2be   : > { %p1350_p7 = pneg %p1349_p5 }
 0x2c0   : > { %1558 = dma.done.wait (%p1350_p7), %s1117_s1, 512  }
 0x2c1   : > { %1560 = vsyncadd (%p1350_p7), %s1117_s1, 4294966784  ;;  %s2118_s11 = sadd.s32 4294967294, %s1587_s29  }
 0x2c2   : > { %s1125_s30 = sand.u32 1, %s2118_s11  }
 0x2c3   : > { %s1126_s16 = scalar_lea.sflag [#allocation7], %s1125_s30 }
 0x2c4   : > { %1562 = dma.done.wait (%p1350_p7), %s1126_s16, 1024  }
 0x2c5   : > { %1564 = vsyncadd (%p1350_p7), %s1126_s16, 4294966272  ;;  %s25_s29 = sadd.s32 1, %s1587_s29   ;;  %s2119_s24 = smov %s1571_s25 }
 0x2c6   : > { %p22_p4 = scmp.ge.s32.totalorder %s25_s29, 4   ;;  %s2120_s25 = smov %s1575_s26 }
 0x2c7   : > { %s2121_s26 = smov %s1706_s14  ;;  %s2122_s27 = smov %s1583_s28 }
 0x2c8   : > { %s2123_s28 = smov %s2125_s9  ;;  %24 = sbr.rel (!%p22_p4) target bundleno = 11 (0xb), region = 118 }
 0x2cd   :  { %1140 = vsyncpa [#allocation3], 1 }
 0x2ce   :  { %1142 = vsyncpa [#allocation3 + $0x1], 1 }
 0x2cf   :  { %1143 = vsyncpa [#allocation4], 1 }
 0x2d0   :  { %1145 = vsyncpa [#allocation4 + $0x1], 1 }
 0x2d1   :  { %1146 = vsyncpa [#allocation7], 1 }
 0x2d2   :  { %1148 = vsyncpa [#allocation7 + $0x1], 1 }

</bundles_post_ra>
